<compile_context>
chip_gen: v5e
topology: v5e:2x2
jax: 0.10.0
libtpu: 0.0.40
codegen_flags: <defaults>
</compile_context>

<pallas_src>
import functools

import jax
import jax.numpy as jnp
from jax import lax
from jax.experimental import pallas as pl
from jax.experimental.pallas import tpu as pltpu

FUDGE = 1e-7


def _round_up(x, m):
    return ((x + m - 1) // m) * m


def _decoder_kernel(adj_ref, z_ref, zrow_ref, out_ref, *, beta, tn):
    j = pl.program_id(1)
    col_start = pl.multiple_of(j * tn, tn)

    # Column slab sliced from the fully VMEM-resident z (z rows are padded to
    # a multiple of tn, so this slice is always in bounds). The row slab
    # arrives pre-blocked via its own BlockSpec (re-fetched only when the row
    # block index changes).
    zcol = z_ref[pl.ds(col_start, tn), :]     # (tn, D)
    zrow = zrow_ref[...]                      # (tm, D)

    # NT contraction on the MXU with f32 accumulation: (tm, D) x (tn, D)^T.
    logits = lax.dot_general(
        zrow, zcol,
        dimension_numbers=(((1,), (1,)), ((), ())),
        preferred_element_type=jnp.float32,
    )

    # mask = adj * beta + 1, rebuilt on the VPU from the 1 B/elem adjacency.
    mask = adj_ref[...].astype(jnp.float32) * beta + 1.0

    adj_prob = jax.nn.sigmoid(logits * mask)
    out_ref[...] = ((adj_prob + FUDGE) * (1.0 - 2.0 * FUDGE)).astype(out_ref.dtype)


def inner_product_decoder_masked(z, adj, beta=0.5, *,
                                 tile_rows=256, tile_cols=2048,
                                 out_dtype=jnp.float32):
    """z: [N, D] f32, adj: [N, N] (0/1 int8 or any numeric dtype) -> [N, N].

    Computes (sigmoid((z @ z.T) * (adj*beta + 1)) + 1e-7) * (1 - 2e-7).
    """
    N, D = z.shape
    assert adj.shape == (N, N)

    # Tile: sublane dim modest, lane dim long (output writeback dominates HBM
    # traffic -> long contiguous bursts). Capped at the (8,128)-rounded N.
    tm = min(tile_rows, _round_up(N, 8))
    tn = min(tile_cols, _round_up(N, 128))

    # Only z (N*D, tiny vs. N*N) is padded, so the in-kernel column slice is
    # always in bounds; adjacency and output stay unpadded (edge blocks are
    # masked by Mosaic).
    n_rows_z = _round_up(N, tn)
    if n_rows_z != N:
        z = jnp.pad(z, ((0, n_rows_z - N), (0, 0)))

    grid = (pl.cdiv(N, tm), pl.cdiv(N, tn))

    out_isize = jnp.dtype(out_dtype).itemsize
    cost = pl.CostEstimate(
        flops=2 * N * N * D,
        transcendentals=N * N,                                    # sigmoid
        bytes_accessed=(N * N * adj.dtype.itemsize                # adj read
                        + 2 * n_rows_z * D * z.dtype.itemsize     # resident z + row slabs
                        + N * N * out_isize),                     # output write
    )

    kernel = functools.partial(_decoder_kernel, beta=float(beta), tn=tn)

    return pl.pallas_call(
        kernel,
        out_shape=jax.ShapeDtypeStruct((N, N), out_dtype),
        grid_spec=pltpu.PrefetchScalarGridSpec(
            num_scalar_prefetch=0,
            grid=grid,
            in_specs=[
                # int8 adjacency tile: the dominant HBM read (1 B/elem).
                pl.BlockSpec((tm, tn), lambda i, j: (i, j)),
                # z fully resident in VMEM across the whole grid (col slab).
                pl.BlockSpec((n_rows_z, D), lambda i, j: (0, 0)),
                # Row slab, re-DMA'd only when the row-block index changes.
                pl.BlockSpec((tm, D), lambda i, j: (i, 0)),
            ],
            out_specs=pl.BlockSpec((tm, tn), lambda i, j: (i, j)),
        ),
        compiler_params=pltpu.CompilerParams(
            dimension_semantics=("parallel", "parallel"),
            vmem_limit_bytes=32 * 1024 * 1024,
        ),
        cost_estimate=cost,
    )(adj, z, z)


def _reference(z, adj, beta):
    mask = adj.astype(jnp.float32) * beta + 1.0
    prob = jax.nn.sigmoid((z @ z.T) * mask)
    return (prob + FUDGE) * (1.0 - 2.0 * FUDGE)


if __name__ == "__main__":
    key = jax.random.PRNGKey(0)
    k_z, k_adj = jax.random.split(key)

    D = 32
    beta = 0.5

    # Case 1: tile-aligned N. Case 2: N not a multiple of the tile (exercises
    # the unpadded edge-block path that replaced the host-side pad + slice).
    for N in (256, 200):
        z = jax.random.normal(k_z, (N, D), dtype=jnp.float32)

        # Deterministic synthetic sparse 0/1 adjacency (symmetric), int8.
        adj_dense = (jax.random.uniform(k_adj, (N, N)) < 0.1).astype(jnp.int8)
        adj_dense = jnp.maximum(adj_dense, adj_dense.T)

        out = inner_product_decoder_masked(z, adj_dense, beta=beta)
        out = jax.block_until_ready(out)

        ref = _reference(z, adj_dense, beta)
        assert out.shape == (N, N)
        assert jnp.allclose(out, ref, atol=1e-5, rtol=1e-5), (
            f"mismatch vs reference at N={N}")

    print("KERNEL_OK")
</pallas_src>

<mosaic_0001>
module attributes {stable_mosaic.version = 11 : i64} {
  func.func @_decoder_kernel(%arg0: i32, %arg1: i32, %arg2: memref<256x256xi8, #tpu.memory_space<vmem>>, %arg3: memref<256x32xf32, #tpu.memory_space<vmem>>, %arg4: memref<256x32xf32, #tpu.memory_space<vmem>>, %arg5: memref<256x256xf32, #tpu.memory_space<vmem>>) attributes {dimension_semantics = [#tpu.dimension_semantics<parallel>, #tpu.dimension_semantics<parallel>], iteration_bounds = array<i64: 1, 1>, scalar_prefetch = 0 : i64, scratch_operands = 0 : i64, tpu.core_type = #tpu.core_type<tc>, window_params = [{transform_indices = @transform_0, window_bounds = array<i64: 256, 256>}, {pipeline_mode = #tpu.pipeline_mode<synchronous>, transform_indices = @transform_1, window_bounds = array<i64: 256, 32>}, {transform_indices = @transform_2, window_bounds = array<i64: 256, 32>}, {transform_indices = @transform_3, window_bounds = array<i64: 256, 256>}]} {
    %c256_i32 = arith.constant 256 : i32
    %0 = arith.muli %arg1, %c256_i32 : i32
    %1 = tpu.assume_multiple %0, 256 : i32
    %2 = arith.index_cast %1 : i32 to index
    %c0 = arith.constant 0 : index
    %3 = vector.load %arg3[%2, %c0] : memref<256x32xf32, #tpu.memory_space<vmem>>, vector<256x32xf32>
    %c0_0 = arith.constant 0 : index
    %c0_1 = arith.constant 0 : index
    %4 = vector.load %arg4[%c0_0, %c0_1] : memref<256x32xf32, #tpu.memory_space<vmem>>, vector<256x32xf32>
    %cst = arith.constant dense<0.000000e+00> : vector<256x256xf32>
    %5 = tpu.matmul %4, %3, %cst {dimension_numbers = #tpu.dot_dimension_numbers<[1], [1], [0], [0], [0, 0, 1, 0], [], []>} : vector<256x32xf32>, vector<256x32xf32>, vector<256x256xf32> -> vector<256x256xf32>
    %c0_2 = arith.constant 0 : index
    %c0_3 = arith.constant 0 : index
    %6 = vector.load %arg2[%c0_2, %c0_3] : memref<256x256xi8, #tpu.memory_space<vmem>>, vector<256x256xi8>
    %7 = arith.sitofp %6 : vector<256x256xi8> to vector<256x256xf32>
    %cst_4 = arith.constant 5.000000e-01 : f32
    %8 = vector.broadcast %cst_4 : f32 to vector<256x256xf32>
    %9 = arith.mulf %7, %8 : vector<256x256xf32>
    %cst_5 = arith.constant 1.000000e+00 : f32
    %10 = vector.broadcast %cst_5 : f32 to vector<256x256xf32>
    %11 = arith.addf %9, %10 : vector<256x256xf32>
    %12 = arith.mulf %5, %11 : vector<256x256xf32>
    %13 = arith.negf %12 : vector<256x256xf32>
    %14 = math.exp %13 : vector<256x256xf32>
    %cst_6 = arith.constant 1.000000e+00 : f32
    %15 = vector.broadcast %cst_6 : f32 to vector<256x256xf32>
    %16 = arith.addf %15, %14 : vector<256x256xf32>
    %17 = arith.divf %15, %16 : vector<256x256xf32>
    %cst_7 = arith.constant 1.000000e-07 : f32
    %18 = vector.broadcast %cst_7 : f32 to vector<256x256xf32>
    %19 = arith.addf %17, %18 : vector<256x256xf32>
    %cst_8 = arith.constant 0.999999821 : f32
    %20 = vector.broadcast %cst_8 : f32 to vector<256x256xf32>
    %21 = arith.mulf %19, %20 : vector<256x256xf32>
    %c0_9 = arith.constant 0 : index
    %c0_10 = arith.constant 0 : index
    %22 = vector.load %arg5[%c0_9, %c0_10] : memref<256x256xf32, #tpu.memory_space<vmem>>, vector<256x256xf32>
    tpu.vector_store %arg5[%c0_9, %c0_10], %21 {strides = array<i32>} : memref<256x256xf32, #tpu.memory_space<vmem>>, vector<256x256xf32>,
    return
  }
  func.func @transform_0(%arg0: i32, %arg1: i32) -> (i32, i32) {
    %c0_i32 = arith.constant 0 : i32
    return %arg0, %arg1 : i32, i32
  }
  func.func @transform_1(%arg0: i32, %arg1: i32) -> (i32, i32) {
    %c0_i32 = arith.constant 0 : i32
    %c0_i32_0 = arith.constant 0 : i32
    %c0_i32_1 = arith.constant 0 : i32
    return %c0_i32, %c0_i32_0 : i32, i32
  }
  func.func @transform_2(%arg0: i32, %arg1: i32) -> (i32, i32) {
    %c0_i32 = arith.constant 0 : i32
    %c0_i32_0 = arith.constant 0 : i32
    return %arg0, %c0_i32 : i32, i32
  }
  func.func @transform_3(%arg0: i32, %arg1: i32) -> (i32, i32) {
    %c0_i32 = arith.constant 0 : i32
    return %arg0, %arg1 : i32, i32
  }
}

</mosaic_0001>

<bundles_post_ra>
// kernel: tpu_custom_call.1
= control target key start
LH: loop header
LB: loop body
LE: loop exit
PB: predicated region body
PF: predicated region fallthrough
CT: control target
= control target key end

     0   :  { %vm81_vm0 = vcmask 261120   ;;  %s4151_s0 = inlined_call_operand.vmem [shape: s8[256,256], index: 0, kind: input, shape index: {}]   ;;  %s4152_s1 = inlined_call_operand.vmem [shape: f32[256,32], index: 1, kind: input, shape index: {}]   ;;  %s4153_s2 = inlined_call_operand.vmem [shape: f32[256,32], index: 2, kind: input, shape index: {}]   ;;  %s4154_s3 = inlined_call_operand.hbm [shape: f32[256,256], index: 3, kind: output, shape index: {}]  }
   0x1   :  { %v32_v0 = vld [vmem:[%s4152_s1 + $0x78] sm:$0xff]  ;;  %v31_v2 = vld [vmem:[%s4152_s1 + $0x70] sm:$0xff]  ;;  %v30_v4 = vld [vmem:[%s4152_s1 + $0x68] sm:$0xff] }
   0x2   :  { %v48_v1 = vld [vmem:[%s4152_s1 + $0xf8] sm:$0xff]  ;;  %2262 = vmatpush.xpose.msk.msra.mxu0 %vm81_vm0, %v32_v0  ;;  %2422 = vmatpush.xpose.msk.msra.mxu2 %vm81_vm0, %v32_v0  ;;  %v47_v3 = vld [vmem:[%s4152_s1 + $0xf0] sm:$0xff]  ;;  %v46_v5 = vld [vmem:[%s4152_s1 + $0xe8] sm:$0xff] }
   0x3   :  { %2310 = vmatpush.xpose.msk.msra.mxu1 %vm81_vm0, %v48_v1  ;;  %2438 = vmatpush.xpose.msk.msra.mxu3 %vm81_vm0, %v48_v1 }
   0x6   :  { %2263 = vmatpush.xpose.msk.msra.mxu0 %vm81_vm0, %v31_v2  ;;  %2423 = vmatpush.xpose.msk.msra.mxu2 %vm81_vm0, %v31_v2 }
   0x7   :  { %2311 = vmatpush.xpose.msk.msra.mxu1 %vm81_vm0, %v47_v3  ;;  %2439 = vmatpush.xpose.msk.msra.mxu3 %vm81_vm0, %v47_v3 }
   0x8   :  { %8 = vsyncpa [#allocation3], 0  ;;  %v29_v6 = vld [vmem:[%s4152_s1 + $0x60] sm:$0xff]  ;;  %v28_v8 = vld [vmem:[%s4152_s1 + $0x58] sm:$0xff]  ;;  %s2250_s8 = sshll.u32 %s4154_s3, 4  ;;  %s2740_s9 = smov 256   ;;  %s2251_s8 = int_to_ptr.hbm [resolvable:$true] %s2250_s8 }
   0x9   :  { %v45_v7 = vld [vmem:[%s4152_s1 + $0xe0] sm:$0xff]  ;;  %v44_v9 = vld [vmem:[%s4152_s1 + $0xd8] sm:$0xff]  ;;  %v27_v10 = vld [vmem:[%s4152_s1 + $0x50] sm:$0xff] }
   0xa   :  { %2264 = vmatpush.xpose.msk.msra.mxu0 %vm81_vm0, %v30_v4  ;;  %2424 = vmatpush.xpose.msk.msra.mxu2 %vm81_vm0, %v30_v4  ;;  %v43_v11 = vld [vmem:[%s4152_s1 + $0xd0] sm:$0xff]  ;;  %v26_v12 = vld [vmem:[%s4152_s1 + $0x48] sm:$0xff]  ;;  %v25_v14 = vld [vmem:[%s4152_s1 + $0x40] sm:$0xff] }
   0xb   :  { %2312 = vmatpush.xpose.msk.msra.mxu1 %vm81_vm0, %v46_v5  ;;  %2440 = vmatpush.xpose.msk.msra.mxu3 %vm81_vm0, %v46_v5  ;;  %v42_v13 = vld [vmem:[%s4152_s1 + $0xc8] sm:$0xff]  ;;  %v41_v15 = vld [vmem:[%s4152_s1 + $0xc0] sm:$0xff]  ;;  %v24_v16 = vld [vmem:[%s4152_s1 + $0x38] sm:$0xff] }
   0xc   :  { %v40_v17 = vld [vmem:[%s4152_s1 + $0xb8] sm:$0xff]  ;;  %v23_v18 = vld [vmem:[%s4152_s1 + $0x30] sm:$0xff]  ;;  %v22_v20 = vld [vmem:[%s4152_s1 + $0x28] sm:$0xff] }
   0xd   :  { %v39_v19 = vld [vmem:[%s4152_s1 + $0xb0] sm:$0xff]  ;;  %v38_v21 = vld [vmem:[%s4152_s1 + $0xa8] sm:$0xff]  ;;  %v21_v22 = vld [vmem:[%s4152_s1 + $0x20] sm:$0xff] }
   0xe   :  { %2265 = vmatpush.xpose.msk.msra.mxu0 %vm81_vm0, %v29_v6  ;;  %2425 = vmatpush.xpose.msk.msra.mxu2 %vm81_vm0, %v29_v6  ;;  %v37_v23 = vld [vmem:[%s4152_s1 + $0xa0] sm:$0xff]  ;;  %v20_v24 = vld [vmem:[%s4152_s1 + $0x18] sm:$0xff]  ;;  %v19_v26 = vld [vmem:[%s4152_s1 + $0x10] sm:$0xff] }
   0xf   :  { %2313 = vmatpush.xpose.msk.msra.mxu1 %vm81_vm0, %v45_v7  ;;  %2441 = vmatpush.xpose.msk.msra.mxu3 %vm81_vm0, %v45_v7  ;;  %v36_v25 = vld [vmem:[%s4152_s1 + $0x98] sm:$0xff]  ;;  %v35_v27 = vld [vmem:[%s4152_s1 + $0x90] sm:$0xff]  ;;  %v18_v28 = vld [vmem:[%s4152_s1 + $0x8] sm:$0xff] }
  0x10   :  { %v34_v29 = vld [vmem:[%s4152_s1 + $0x88] sm:$0xff]  ;;  %v17_v30 = vld [vmem:[%s4152_s1] sm:$0xff]  ;;  %v51_v36 = vld [vmem:[%s4153_s2 + $0x10] sm:$0xff] }
  0x11   :  { %v33_v31 = vld [vmem:[%s4152_s1 + $0x80] sm:$0xff]  ;;  %v50_v34 = vld [vmem:[%s4153_s2 + $0x8] sm:$0xff]  ;;  %v67_v37 = vld [vmem:[%s4153_s2 + $0x90] sm:$0xff] }
  0x12   :  { %2266 = vmatpush.xpose.msk.msra.mxu0 %vm81_vm0, %v28_v8  ;;  %2426 = vmatpush.xpose.msk.msra.mxu2 %vm81_vm0, %v28_v8  ;;  %v49_v32 = vld [vmem:[%s4153_s2] sm:$0xff]  ;;  %v66_v35 = vld [vmem:[%s4153_s2 + $0x88] sm:$0xff]  ;;  %v52_v38 = vld [vmem:[%s4153_s2 + $0x18] sm:$0xff] }
  0x13   :  { %2314 = vmatpush.xpose.msk.msra.mxu1 %vm81_vm0, %v44_v9  ;;  %2442 = vmatpush.xpose.msk.msra.mxu3 %vm81_vm0, %v44_v9  ;;  %v65_v33 = vld [vmem:[%s4153_s2 + $0x80] sm:$0xff]  ;;  %v68_v39 = vld [vmem:[%s4153_s2 + $0x98] sm:$0xff]  ;;  %v54_v42 = vld [vmem:[%s4153_s2 + $0x28] sm:$0xff] }
  0x14   :  { %v53_v40 = vld [vmem:[%s4153_s2 + $0x20] sm:$0xff]  ;;  %v70_v43 = vld [vmem:[%s4153_s2 + $0xa8] sm:$0xff]  ;;  %v55_v44 = vld [vmem:[%s4153_s2 + $0x30] sm:$0xff] }
  0x15   :  { %v69_v41 = vld [vmem:[%s4153_s2 + $0xa0] sm:$0xff]  ;;  %v71_v45 = vld [vmem:[%s4153_s2 + $0xb0] sm:$0xff]  ;;  %v56_v46 = vld [vmem:[%s4153_s2 + $0x38] sm:$0xff] }
  0x16   :  { %2267 = vmatpush.xpose.msk.msra.mxu0 %vm81_vm0, %v27_v10  ;;  %2427 = vmatpush.xpose.msk.msra.mxu2 %vm81_vm0, %v27_v10  ;;  %v72_v47 = vld [vmem:[%s4153_s2 + $0xb8] sm:$0xff]  ;;  %v57_v48 = vld [vmem:[%s4153_s2 + $0x40] sm:$0xff]  ;;  %v58_v50 = vld [vmem:[%s4153_s2 + $0x48] sm:$0xff] }
  0x17   :  { %2315 = vmatpush.xpose.msk.msra.mxu1 %vm81_vm0, %v43_v11  ;;  %2443 = vmatpush.xpose.msk.msra.mxu3 %vm81_vm0, %v43_v11  ;;  %v73_v49 = vld [vmem:[%s4153_s2 + $0xc0] sm:$0xff]  ;;  %v74_v51 = vld [vmem:[%s4153_s2 + $0xc8] sm:$0xff]  ;;  %v59_v52 = vld [vmem:[%s4153_s2 + $0x50] sm:$0xff] }
  0x18   :  { %v75_v53 = vld [vmem:[%s4153_s2 + $0xd0] sm:$0xff]  ;;  %v60_v54 = vld [vmem:[%s4153_s2 + $0x58] sm:$0xff]  ;;  %v61_v56 = vld [vmem:[%s4153_s2 + $0x60] sm:$0xff] }
  0x19   :  { %v76_v55 = vld [vmem:[%s4153_s2 + $0xd8] sm:$0xff]  ;;  %v77_v57 = vld [vmem:[%s4153_s2 + $0xe0] sm:$0xff]  ;;  %v62_v58 = vld [vmem:[%s4153_s2 + $0x68] sm:$0xff] }
  0x1a   :  { %2268 = vmatpush.xpose.msk.msra.mxu0 %vm81_vm0, %v26_v12  ;;  %2428 = vmatpush.xpose.msk.msra.mxu2 %vm81_vm0, %v26_v12  ;;  %v78_v59 = vld [vmem:[%s4153_s2 + $0xe8] sm:$0xff]  ;;  %v3065_v60 = vld [vmem:[%s4151_s0] sm:$0xff]  ;;  %v63_v62 = vld [vmem:[%s4153_s2 + $0x70] sm:$0xff] }
  0x1b   :  { %2316 = vmatpush.xpose.msk.msra.mxu1 %vm81_vm0, %v42_v13  ;;  %2444 = vmatpush.xpose.msk.msra.mxu3 %vm81_vm0, %v42_v13  ;;  %v3070_v61 = vld [vmem:[%s4151_s0 + $0x8] sm:$0xff]  ;;  %v79_v63 = vld [vmem:[%s4153_s2 + $0xf0] sm:$0xff]  ;;  %v516_v0 = vunpack.c.0.s8 %v3065_v60  ;;  %v3087_v2 = vld [vmem:[%s4151_s0 + $0x40] sm:$0xff]  ;;  %v518_v11 = vunpack.c.1.s8 %v3065_v60 }
  0x1c   :  { %v517_v1 = vunpack.c.0.s8 %v3070_v61  ;;  %v3092_v4 = vld [vmem:[%s4151_s0 + $0x48] sm:$0xff]  ;;  %v548_v6 = vunpack.c.0.s8 %v3087_v2  ;;  %v64_v7 = vld [vmem:[%s4153_s2 + $0x78] sm:$0xff]  ;;  %v519_v13 = vunpack.c.1.s8 %v3070_v61 }
  0x1d   :  { %v580_v3 = vcvt.s32.f32 %v516_v0  ;;  %v80_v8 = vld [vmem:[%s4153_s2 + $0xf8] sm:$0xff]  ;;  %v549_v9 = vunpack.c.0.s8 %v3092_v4  ;;  %s2741_s2 = smov 16  }
  0x1e   :  { %2269 = vmatpush.xpose.msk.msra.mxu0 %vm81_vm0, %v25_v14  ;;  %2429 = vmatpush.xpose.msk.msra.mxu2 %vm81_vm0, %v25_v14  ;;  %v581_v5 = vcvt.s32.f32 %v517_v1  ;;  %v612_v14 = vcvt.s32.f32 %v548_v6  ;;  %v523_v1 = vunpack.c.3.s8 %v3070_v61 }
  0x1f   :  { %2317 = vmatpush.xpose.msk.msra.mxu1 %vm81_vm0, %v41_v15  ;;  %2445 = vmatpush.xpose.msk.msra.mxu3 %vm81_vm0, %v41_v15  ;;  %v644_v10 = vmul.f32 0.5, %v580_v3  ;;  %v613_v15 = vcvt.s32.f32 %v549_v9 }
  0x20   :  { %v645_v12 = vmul.f32 0.5, %v581_v5 }
  0x22   :  { %2270 = vmatpush.xpose.msk.msra.mxu0 %vm81_vm0, %v24_v16  ;;  %2430 = vmatpush.xpose.msk.msra.mxu2 %vm81_vm0, %v24_v16  ;;  %v550_v16 = vunpack.c.1.s8 %v3087_v2 }
  0x23   :  { %2318 = vmatpush.xpose.msk.msra.mxu1 %vm81_vm0, %v40_v17  ;;  %2446 = vmatpush.xpose.msk.msra.mxu3 %vm81_vm0, %v40_v17  ;;  %v708_v17 = vadd.f32 1.0, %v644_v10 }
  0x26   :  { %2271 = vmatpush.xpose.msk.msra.mxu0 %vm81_vm0, %v23_v18  ;;  %2431 = vmatpush.xpose.msk.msra.mxu2 %vm81_vm0, %v23_v18  ;;  %v582_v18 = vcvt.s32.f32 %v518_v11 }
  0x27   :  { %2319 = vmatpush.xpose.msk.msra.mxu1 %vm81_vm0, %v39_v19  ;;  %2447 = vmatpush.xpose.msk.msra.mxu3 %vm81_vm0, %v39_v19  ;;  %v709_v19 = vadd.f32 1.0, %v645_v12 }
  0x2a   :  { %2272 = vmatpush.xpose.msk.msra.mxu0 %vm81_vm0, %v22_v20  ;;  %2432 = vmatpush.xpose.msk.msra.mxu2 %vm81_vm0, %v22_v20  ;;  %v583_v20 = vcvt.s32.f32 %v519_v13 }
  0x2b   :  { %2320 = vmatpush.xpose.msk.msra.mxu1 %vm81_vm0, %v38_v21  ;;  %2448 = vmatpush.xpose.msk.msra.mxu3 %vm81_vm0, %v38_v21  ;;  %v676_v21 = vmul.f32 0.5, %v612_v14  ;;  %v587_v14 = vcvt.s32.f32 %v523_v1 }
  0x2e   :  { %2273 = vmatpush.xpose.msk.msra.mxu0 %vm81_vm0, %v21_v22  ;;  %2433 = vmatpush.xpose.msk.msra.mxu2 %vm81_vm0, %v21_v22 }
  0x2f   :  { %2321 = vmatpush.xpose.msk.msra.mxu1 %vm81_vm0, %v37_v23  ;;  %2449 = vmatpush.xpose.msk.msra.mxu3 %vm81_vm0, %v37_v23  ;;  %v677_v23 = vmul.f32 0.5, %v613_v15 }
  0x32   :  { %2274 = vmatpush.xpose.msk.msra.mxu0 %vm81_vm0, %v20_v24  ;;  %2434 = vmatpush.xpose.msk.msra.mxu2 %vm81_vm0, %v20_v24  ;;  %v614_v24 = vcvt.s32.f32 %v550_v16 }
  0x33   :  { %2322 = vmatpush.xpose.msk.msra.mxu1 %vm81_vm0, %v36_v25  ;;  %2450 = vmatpush.xpose.msk.msra.mxu3 %vm81_vm0, %v36_v25 }
  0x36   :  { %2275 = vmatpush.xpose.msk.msra.mxu0 %vm81_vm0, %v19_v26  ;;  %2435 = vmatpush.xpose.msk.msra.mxu2 %vm81_vm0, %v19_v26 }
  0x37   :  { %2323 = vmatpush.xpose.msk.msra.mxu1 %vm81_vm0, %v35_v27  ;;  %2451 = vmatpush.xpose.msk.msra.mxu3 %vm81_vm0, %v35_v27  ;;  %v646_v27 = vmul.f32 0.5, %v582_v18 }
  0x3a   :  { %2276 = vmatpush.xpose.msk.msra.mxu0 %vm81_vm0, %v18_v28  ;;  %2436 = vmatpush.xpose.msk.msra.mxu2 %vm81_vm0, %v18_v28 }
  0x3b   :  { %2324 = vmatpush.xpose.msk.msra.mxu1 %vm81_vm0, %v34_v29  ;;  %2452 = vmatpush.xpose.msk.msra.mxu3 %vm81_vm0, %v34_v29  ;;  %v647_v29 = vmul.f32 0.5, %v583_v20 }
  0x3e   :  { %2277 = vmatpush.xpose.msk.msra.mxu0 %vm81_vm0, %v17_v30  ;;  %2437 = vmatpush.xpose.msk.msra.mxu2 %vm81_vm0, %v17_v30  ;;  %v551_v30 = vunpack.c.1.s8 %v3092_v4 }
  0x3f   :  { %2325 = vmatpush.xpose.msk.msra.mxu1 %vm81_vm0, %v33_v31  ;;  %2453 = vmatpush.xpose.msk.msra.mxu3 %vm81_vm0, %v33_v31 }
  0x41   :  { %2278 = vmatmul.msk.f32.vlgmr.msra.gmra.mxu0 %vm81_vm0, %v49_v32  ;;  %2294 = vmatmul.msk.f32.vlgmr.msra.gmra.mxu2 %vm81_vm0, %v65_v33 }
  0x42   :  { %2326 = vmatmul.msk.f32.vlgmr.msra.gmra.mxu1 %vm81_vm0, %v49_v32  ;;  %2342 = vmatmul.msk.f32.vlgmr.msra.gmra.mxu3 %vm81_vm0, %v65_v33  ;;  %v740_v32 = vadd.f32 1.0, %v676_v21  ;;  %v520_v33 = vunpack.c.2.s8 %v3065_v60 }
  0x49   :  { %2279 = vmatmul.msk.f32.gmra.mxu0 %vm81_vm0, %v50_v34  ;;  %2295 = vmatmul.msk.f32.gmra.mxu2 %vm81_vm0, %v66_v35 }
  0x4a   :  { %2327 = vmatmul.msk.f32.gmra.mxu1 %vm81_vm0, %v50_v34  ;;  %2343 = vmatmul.msk.f32.gmra.mxu3 %vm81_vm0, %v66_v35  ;;  %v741_v35 = vadd.f32 1.0, %v677_v23 }
  0x51   :  { %2280 = vmatmul.msk.f32.gmra.mxu0 %vm81_vm0, %v51_v36  ;;  %2296 = vmatmul.msk.f32.gmra.mxu2 %vm81_vm0, %v67_v37 }
  0x52   :  { %2328 = vmatmul.msk.f32.gmra.mxu1 %vm81_vm0, %v51_v36  ;;  %2344 = vmatmul.msk.f32.gmra.mxu3 %vm81_vm0, %v67_v37  ;;  %v678_v36 = vmul.f32 0.5, %v614_v24  ;;  %v521_v37 = vunpack.c.2.s8 %v3070_v61 }
  0x59   :  { %2281 = vmatmul.msk.f32.gmra.mxu0 %vm81_vm0, %v52_v38  ;;  %2297 = vmatmul.msk.f32.gmra.mxu2 %vm81_vm0, %v68_v39 }
  0x5a   :  { %2329 = vmatmul.msk.f32.gmra.mxu1 %vm81_vm0, %v52_v38  ;;  %2345 = vmatmul.msk.f32.gmra.mxu3 %vm81_vm0, %v68_v39  ;;  %v710_v38 = vadd.f32 1.0, %v646_v27  ;;  %v552_v39 = vunpack.c.2.s8 %v3087_v2 }
  0x61   :  { %2282 = vmatmul.msk.f32.gmra.mxu0 %vm81_vm0, %v53_v40  ;;  %2298 = vmatmul.msk.f32.gmra.mxu2 %vm81_vm0, %v69_v41 }
  0x62   :  { %2330 = vmatmul.msk.f32.gmra.mxu1 %vm81_vm0, %v53_v40  ;;  %2346 = vmatmul.msk.f32.gmra.mxu3 %vm81_vm0, %v69_v41  ;;  %v553_v40 = vunpack.c.2.s8 %v3092_v4 }
  0x69   :  { %2283 = vmatmul.msk.f32.gmra.mxu0 %vm81_vm0, %v54_v42  ;;  %2299 = vmatmul.msk.f32.gmra.mxu2 %vm81_vm0, %v70_v43 }
  0x6a   :  { %2331 = vmatmul.msk.f32.gmra.mxu1 %vm81_vm0, %v54_v42  ;;  %2347 = vmatmul.msk.f32.gmra.mxu3 %vm81_vm0, %v70_v43  ;;  %v711_v42 = vadd.f32 1.0, %v647_v29  ;;  %v615_v43 = vcvt.s32.f32 %v551_v30 }
  0x71   :  { %2284 = vmatmul.msk.f32.gmra.mxu0 %vm81_vm0, %v55_v44  ;;  %2300 = vmatmul.msk.f32.gmra.mxu2 %vm81_vm0, %v71_v45 }
  0x72   :  { %2332 = vmatmul.msk.f32.gmra.mxu1 %vm81_vm0, %v55_v44  ;;  %2348 = vmatmul.msk.f32.gmra.mxu3 %vm81_vm0, %v71_v45 }
  0x79   :  { %2285 = vmatmul.msk.f32.gmra.mxu0 %vm81_vm0, %v56_v46  ;;  %2301 = vmatmul.msk.f32.gmra.mxu2 %vm81_vm0, %v72_v47 }
  0x7a   :  { %2333 = vmatmul.msk.f32.gmra.mxu1 %vm81_vm0, %v56_v46  ;;  %2349 = vmatmul.msk.f32.gmra.mxu3 %vm81_vm0, %v72_v47  ;;  %v584_v46 = vcvt.s32.f32 %v520_v33  ;;  %v3135_v33 = vmul.f32 0.5, %v587_v14 }
  0x7c   :  { %v648_v0 = vmul.f32 0.5, %v584_v46 }
  0x7e   :  { %v712_v61 = vadd.f32 1.0, %v648_v0 }
  0x81   :  { %2286 = vmatmul.msk.f32.gmra.mxu0 %vm81_vm0, %v57_v48  ;;  %2302 = vmatmul.msk.f32.gmra.mxu2 %vm81_vm0, %v73_v49 }
  0x82   :  { %2334 = vmatmul.msk.f32.gmra.mxu1 %vm81_vm0, %v57_v48  ;;  %2350 = vmatmul.msk.f32.gmra.mxu3 %vm81_vm0, %v73_v49  ;;  %v742_v49 = vadd.f32 1.0, %v678_v36 }
  0x89   :  { %2287 = vmatmul.msk.f32.gmra.mxu0 %vm81_vm0, %v58_v50  ;;  %2303 = vmatmul.msk.f32.gmra.mxu2 %vm81_vm0, %v74_v51 }
  0x8a   :  { %2335 = vmatmul.msk.f32.gmra.mxu1 %vm81_vm0, %v58_v50  ;;  %2351 = vmatmul.msk.f32.gmra.mxu3 %vm81_vm0, %v74_v51  ;;  %v585_v50 = vcvt.s32.f32 %v521_v37 }
  0x91   :  { %2288 = vmatmul.msk.f32.gmra.mxu0 %vm81_vm0, %v59_v52  ;;  %2304 = vmatmul.msk.f32.gmra.mxu2 %vm81_vm0, %v75_v53 }
  0x92   :  { %2336 = vmatmul.msk.f32.gmra.mxu1 %vm81_vm0, %v59_v52  ;;  %2352 = vmatmul.msk.f32.gmra.mxu3 %vm81_vm0, %v75_v53 }
  0x99   :  { %2289 = vmatmul.msk.f32.gmra.mxu0 %vm81_vm0, %v60_v54  ;;  %2305 = vmatmul.msk.f32.gmra.mxu2 %vm81_vm0, %v76_v55 }
  0x9a   :  { %2337 = vmatmul.msk.f32.gmra.mxu1 %vm81_vm0, %v60_v54  ;;  %2353 = vmatmul.msk.f32.gmra.mxu3 %vm81_vm0, %v76_v55  ;;  %v616_v54 = vcvt.s32.f32 %v552_v39  ;;  %v617_v55 = vcvt.s32.f32 %v553_v40 }
  0x9c   :  { %v680_v9 = vmul.f32 0.5, %v616_v54  ;;  %v681_v10 = vmul.f32 0.5, %v617_v55 }
  0x9e   :  { %v3127_v23 = vadd.f32 1.0, %v681_v10 }
  0xa1   :  { %2290 = vmatmul.msk.f32.gmra.mxu0 %vm81_vm0, %v61_v56  ;;  %2306 = vmatmul.msk.f32.gmra.mxu2 %vm81_vm0, %v77_v57 }
  0xa2   :  { %2338 = vmatmul.msk.f32.gmra.mxu1 %vm81_vm0, %v61_v56  ;;  %2354 = vmatmul.msk.f32.gmra.mxu3 %vm81_vm0, %v77_v57 }
  0xa9   :  { %2291 = vmatmul.msk.f32.gmra.mxu0 %vm81_vm0, %v62_v58  ;;  %2307 = vmatmul.msk.f32.gmra.mxu2 %vm81_vm0, %v78_v59 }
  0xaa   :  { %2339 = vmatmul.msk.f32.gmra.mxu1 %vm81_vm0, %v62_v58  ;;  %2355 = vmatmul.msk.f32.gmra.mxu3 %vm81_vm0, %v78_v59  ;;  %v679_v58 = vmul.f32 0.5, %v615_v43  ;;  %v522_v59 = vunpack.c.3.s8 %v3065_v60 }
  0xac   :  { %v743_v11 = vadd.f32 1.0, %v679_v58  ;;  %v586_v12 = vcvt.s32.f32 %v522_v59 }
  0xae   :  { %v650_v29 = vmul.f32 0.5, %v586_v12 }
  0xb1   :  { %2292 = vmatmul.msk.f32.gmra.mxu0 %vm81_vm0, %v63_v62  ;;  %2308 = vmatmul.msk.f32.gmra.mxu2 %vm81_vm0, %v79_v63 }
  0xb2   :  { %2340 = vmatmul.msk.f32.gmra.mxu1 %vm81_vm0, %v63_v62  ;;  %2356 = vmatmul.msk.f32.gmra.mxu3 %vm81_vm0, %v79_v63 }
  0xb9   :  { %2293 = vmatmul.msk.f32.gmra.mxu0 %vm81_vm0, %v64_v7  ;;  %2309 = vmatmul.msk.f32.gmra.mxu2 %vm81_vm0, %v80_v8 }
  0xba   :  { %2341 = vmatmul.msk.f32.gmra.mxu1 %vm81_vm0, %v64_v7  ;;  %2357 = vmatmul.msk.f32.gmra.mxu3 %vm81_vm0, %v80_v8  ;;  %v649_v7 = vmul.f32 0.5, %v585_v50 }
  0xbc   :  { %v713_v18 = vadd.f32 1.0, %v649_v7 }
  0xbe   :  { %v291_v22 = vpop.f32.mrf.mxu0 }
  0xbf   :  { %v772_v25 = vmul.f32 %v708_v17, %v291_v22  ;;  %v404_v26 = vpop.f32.mrf.mxu1  ;;  %v3125_v22 = vadd.f32 1.0, %v680_v9 }
  0xc0   :  { %v773_v28 = vmul.f32 %v709_v19, %v404_v26 }
  0xc1   :  { %v2358_v31 = vmul.f32 -1.442695, %v772_v25 }
  0xc2   :  { %v2359_v34 = vmul.f32 -1.442695, %v773_v28 }
  0xc3   :  { %2457 = vpow2.f32 %v2358_v31 }
  0xc4   :  { %2459 = vpow2.f32 %v2359_v34  ;;  %v339_v41 = vpop.f32.mrf.mxu2 }
  0xc5   :  { %v804_v44 = vmul.f32 %v740_v32, %v339_v41  ;;  %v452_v45 = vpop.f32.mrf.mxu3 }
  0xc6   :  { %v805_v47 = vmul.f32 %v741_v35, %v452_v45  ;;  %v294_v48 = vpop.f32.mrf.mxu0 }
  0xc7   :  { %v2390_v51 = vmul.f32 -1.442695, %v804_v44  ;;  %v774_v52 = vmul.f32 %v710_v38, %v294_v48  ;;  %v407_v53 = vpop.f32.mrf.mxu1 }
  0xc8   :  { %v2391_v56 = vmul.f32 -1.442695, %v805_v47  ;;  %v775_v57 = vmul.f32 %v711_v42, %v407_v53  ;;  %v3153_v47 = vadd.f32 1.0, %v650_v29 }
  0xc9   :  { %v2458_v62 = vpop.eup %2457  ;;  %2461 = vpow2.f32 %v2390_v51  ;;  %v2360_v63 = vmul.f32 -1.442695, %v774_v52 }
  0xca   :  { %v2460_v3 = vpop.eup %2459  ;;  %v3116_v5 = vadd.f32 1.0, %v2458_v62  ;;  %2463 = vpow2.f32 %v2391_v56  ;;  %v2361_v6 = vmul.f32 -1.442695, %v775_v57 }
  0xcb   :  { %v3118_v8 = vadd.f32 1.0, %v2460_v3  ;;  %2465 = vpow2.f32 %v2360_v63 }
  0xcc   :  { %2467 = vrcp.f32 %v3116_v5  ;;  %v342_v60 = vpop.f32.mrf.mxu2  ;;  %v1103_v15 = vand.u32 2147483648, %v3116_v5  ;;  %v1101_v20 = vand.u32 2147483647, %v3116_v5  ;;  %vm1097_vm1 = vweird.f32 %v3116_v5 }
  0xcd   :  { %2469 = vrcp.f32 %v3118_v8  ;;  %v455_v13 = vpop.f32.mrf.mxu3  ;;  %v1118_v16 = vand.u32 2147483648, %v3118_v8  ;;  %v806_v21 = vmul.f32 %v742_v49, %v342_v60  ;;  %v1116_v25 = vand.u32 2147483647, %v3118_v8 }
  0xce   :  { %2471 = vpow2.f32 %v2361_v6  ;;  %v297_v17 = vpop.f32.mrf.mxu0  ;;  %v807_v27 = vmul.f32 %v743_v11, %v455_v13  ;;  %v1104_v35 = vor.u32 1.1754944e-38, %v1103_v15  ;;  %vm1112_vm2 = vweird.f32 %v3118_v8 }
  0xcf   :  { %v2462_v19 = vpop.eup %2461  ;;  %v410_v28 = vpop.f32.mrf.mxu1  ;;  %v776_v32 = vmul.f32 %v712_v61, %v297_v17  ;;  %v1119_v36 = vor.u32 1.1754944e-38, %v1118_v16  ;;  %vm3140_vm3 = vcmp.eq.f32.partialorder %v1101_v20, 8.507059e+37  ;;  %v2392_v40 = vmul.f32 -1.442695, %v806_v21 }
  0xd0   :  { %v2464_v24 = vpop.eup %2463  ;;  %v3130_v26 = vadd.f32 1.0, %v2462_v19  ;;  %v777_v41 = vmul.f32 %v713_v18, %v410_v28  ;;  %vm3146_vm4 = vcmp.eq.f32.partialorder %v1116_v25, 8.507059e+37  ;;  %v3151_v46 = vmul.f32 -1.442695, %v807_v27 }
  0xd1   :  { %v2466_v30 = vpop.eup %2465  ;;  %v3133_v31 = vadd.f32 1.0, %v2464_v24  ;;  %v3158_v51 = vmul.f32 -1.442695, %v776_v32 }
  0xd2   :  { %v2468_v34 = vpop.eup %2467  ;;  %2473 = vrcp.f32 %v3130_v26  ;;  %v1583_v45 = vand.u32 2147483648, %v3130_v26  ;;  %v1581_v49 = vand.u32 2147483647, %v3130_v26  ;;  %v3156_v50 = vadd.f32 1.0, %v2466_v30 }
  0xd3   :  { %v2470_v37 = vpop.eup %2469  ;;  %v1093_v38 = vmul.f32 %v2468_v34, %v3116_v5  ;;  %2475 = vrcp.f32 %v3133_v31  ;;  %v1596_v53 = vand.u32 2147483647, %v3133_v31  ;;  %v1598_v54 = vand.u32 2147483648, %v3133_v31 }
  0xd4   :  { %v2472_v42 = vpop.eup %2471  ;;  %v1108_v43 = vmul.f32 %v2470_v37, %v3118_v8  ;;  %vm1098_vm5 = vweird.f32 %v2468_v34  ;;  %vm1577_vm6 = vweird.f32 %v3130_v26  ;;  %2477 = vrcp.f32 %v3156_v50 }
  0xd5   :  { %v1094_v48 = vsub.f32 1.0, %v1093_v38  ;;  %v3162_v55 = vadd.f32 1.0, %v2472_v42  ;;  %vm1113_vm7 = vweird.f32 %v2470_v37  ;;  %v1584_v59 = vor.u32 1.1754944e-38, %v1583_v45  ;;  %vm1099_vm10 = vmor %vm1097_vm1, %vm1098_vm5 }
  0xd6   :  { %v1109_v52 = vsub.f32 1.0, %v1108_v43  ;;  %vm1592_vm8 = vweird.f32 %v3133_v31  ;;  %2479 = vpow2.f32 %v2392_v40  ;;  %vm3168_vm9 = vcmp.eq.f32.partialorder %v1581_v49, 8.507059e+37  ;;  %vm1114_vm12 = vmor %vm1112_vm2, %vm1113_vm7 }
  0xd7   :  { %v1095_v56 = vmul.f32 %v2468_v34, %v1094_v48  ;;  %2481 = vrcp.f32 %v3162_v55  ;;  %v3173_v3 = vmul.f32 -1.442695, %v777_v41  ;;  %vm3179_vm11 = vcmp.eq.f32.partialorder %v1596_v53, 8.507059e+37  ;;  %v345_v41 = vpop.f32.mrf.mxu2 }
  0xd8   :  { %v2474_v57 = vpop.eup %2473  ;;  %v1110_v58 = vmul.f32 %v2470_v37, %v1109_v52  ;;  %v1599_v10 = vor.u32 1.1754944e-38, %v1598_v54  ;;  %v1131_v60 = vand.u32 2147483647, %v3156_v50  ;;  %vm1127_vm13 = vweird.f32 %v3156_v50 }
  0xd9   :  { %v2476_v62 = vpop.eup %2475  ;;  %v1096_v63 = vadd.f32 %v2468_v34, %v1095_v56  ;;  %v1573_v0 = vmul.f32 %v2474_v57, %v3130_v26  ;;  %v1133_v5 = vand.u32 2147483648, %v3156_v50  ;;  %vm1578_vm14 = vweird.f32 %v2474_v57 }
  0xda   :  { %v1111_v6 = vadd.f32 %v2470_v37, %v1110_v58  ;;  %v1588_v7 = vmul.f32 %v2476_v62, %v3133_v31  ;;  %v2478_v15 = vpop.eup %2477  ;;  %vm1593_vm15 = vweird.f32 %v2476_v62  ;;  %vm3194_vm0 = vcmp.eq.f32.partialorder %v1131_v60, 8.507059e+37  ;;  %vm1579_vm2 = vmor %vm1577_vm6, %vm1578_vm14  ;;  %v458_v58 = vpop.f32.mrf.mxu3 }
  0xdb   :  { %v1100_v11 = vsel %vm1099_vm10, %v2468_v34, %v1096_v63  ;;  %v1574_v12 = vsub.f32 1.0, %v1573_v0  ;;  %v1123_v21 = vmul.f32 %v2478_v15, %v3156_v50  ;;  %vm1142_vm1 = vweird.f32 %v3162_v55 }
  0xdc   :  { %v1105_v13 = vsel %vm3140_vm3, %v1104_v35, %v1100_v11  ;;  %v1115_v61 = vsel %vm1114_vm12, %v2470_v37, %v1111_v6  ;;  %v1589_v14 = vsub.f32 1.0, %v1588_v7  ;;  %v2480_v8 = vpop.eup %2479  ;;  %v1146_v29 = vand.u32 2147483647, %v3162_v55  ;;  %vm1594_vm3 = vmor %vm1592_vm8, %vm1593_vm15 }
  0xdd   :  { %v2052_v16 = vadd.f32 1e-07, %v1105_v13  ;;  %v1120_v17 = vsel %vm3146_vm4, %v1119_v36, %v1115_v61  ;;  %v1575_v18 = vmul.f32 %v2474_v57, %v1574_v12  ;;  %v2482_v25 = vpop.eup %2481  ;;  %v1124_v34 = vsub.f32 1.0, %v1123_v21 }
  0xde   :  { %v2053_v19 = vadd.f32 1e-07, %v1120_v17  ;;  %v1590_v20 = vmul.f32 %v2476_v62, %v1589_v14  ;;  %v1138_v35 = vmul.f32 %v2482_v25, %v3162_v55  ;;  %vm1128_vm4 = vweird.f32 %v2478_v15 }
  0xdf   :  { %v2116_v27 = vmul.f32 0.9999998, %v2052_v16  ;;  %v1576_v28 = vadd.f32 %v2474_v57, %v1575_v18  ;;  %v3207_v37 = vadd.f32 1.0, %v2480_v8  ;;  %2483 = vpow2.f32 %v3151_v46  ;;  %vm1129_vm6 = vmor %vm1127_vm13, %vm1128_vm4 }
  0xe0   :  { %v2117_v30 = vmul.f32 0.9999998, %v2053_v19  ;;  %v1591_v32 = vadd.f32 %v2476_v62, %v1590_v20  ;;  %v1125_v39 = vmul.f32 %v2478_v15, %v1124_v34  ;;  %v1139_v40 = vsub.f32 1.0, %v1138_v35 }
  0xe1   :  { %2180 = vst [vmem:[#allocation2] sm:$0xff] %v2116_v27  ;;  %v1580_v36 = vsel %vm1579_vm2, %v2474_v57, %v1576_v28  ;;  %v1148_v31 = vand.u32 2147483648, %v3162_v55  ;;  %2485 = vrcp.f32 %v3207_v37  ;;  %vm1143_vm5 = vweird.f32 %v2482_v25 }
  0xe2   :  { %2181 = vst [vmem:[#allocation2 + $0x8] sm:$0xff] %v2117_v30  ;;  %v1585_v26 = vsel %vm3168_vm9, %v1584_v59, %v1580_v36  ;;  %v1595_v38 = vsel %vm1594_vm3, %v2476_v62, %v1591_v32  ;;  %v1126_v45 = vadd.f32 %v2478_v15, %v1125_v39  ;;  %v1140_v48 = vmul.f32 %v2482_v25, %v1139_v40  ;;  %v300_v59 = vpop.f32.mrf.mxu0  ;;  %vm1144_vm8 = vmor %vm1142_vm1, %vm1143_vm5 }
  0xe3   :  { %v2084_v42 = vadd.f32 1e-07, %v1585_v26  ;;  %v1600_v43 = vsel %vm3179_vm11, %v1599_v10, %v1595_v38  ;;  %v1134_v49 = vor.u32 1.1754944e-38, %v1133_v5  ;;  %2487 = vpow2.f32 %v3158_v51 }
  0xe4   :  { %v2085_v44 = vadd.f32 1e-07, %v1600_v43  ;;  %v808_v52 = vmul.f32 %v3125_v22, %v345_v41  ;;  %v1130_v54 = vsel %vm1129_vm6, %v2478_v15, %v1126_v45  ;;  %v1141_v56 = vadd.f32 %v2482_v25, %v1140_v48 }
  0xe5   :  { %v2148_v46 = vmul.f32 0.9999998, %v2084_v42  ;;  %vm3221_vm7 = vcmp.eq.f32.partialorder %v1146_v29, 8.507059e+37  ;;  %v2484_v62 = vpop.eup %2483  ;;  %v1135_v50 = vsel %vm3194_vm0, %v1134_v49, %v1130_v54  ;;  %v1149_v51 = vor.u32 1.1754944e-38, %v1148_v31 }
  0xe6   :  { %v2149_v53 = vmul.f32 0.9999998, %v2085_v44  ;;  %2489 = vpow2.f32 %v3173_v3  ;;  %v2394_v22 = vmul.f32 -1.442695, %v808_v52  ;;  %v2054_v63 = vadd.f32 1e-07, %v1135_v50 }
  0xe7   :  { %2212 = vst [vmem:[#allocation2 + $0x100] sm:$0xff] %v2148_v46  ;;  %v1145_v0 = vsel %vm1144_vm8, %v2482_v25, %v1141_v56  ;;  %v1611_v1 = vand.u32 2147483647, %v3207_v37  ;;  %v3232_v6 = vadd.f32 1.0, %v2484_v62  ;;  %v2486_v7 = vpop.eup %2485  ;;  %v809_v10 = vmul.f32 %v3127_v23, %v458_v58  ;;  %v413_v23 = vpop.f32.mrf.mxu1 }
  0xe8   :  { %2213 = vst [vmem:[#allocation2 + $0x108] sm:$0xff] %v2149_v53  ;;  %v1150_v9 = vsel %vm3221_vm7, %v1149_v51, %v1145_v0  ;;  %2491 = vpow2.f32 %v2394_v22  ;;  %v778_v55 = vmul.f32 %v3153_v47, %v300_v59  ;;  %v2118_v60 = vmul.f32 0.9999998, %v2054_v63 }
  0xe9   :  { %v2055_v11 = vadd.f32 1e-07, %v1150_v9  ;;  %v1603_v3 = vmul.f32 %v2486_v7, %v3207_v37  ;;  %v2488_v12 = vpop.eup %2487  ;;  %v1613_v5 = vand.u32 2147483648, %v3207_v37  ;;  %2493 = vrcp.f32 %v3232_v6 }
  0xea   :  { %v715_v13 = vadd.f32 1.0, %v3135_v33  ;;  %2182 = vst [vmem:[#allocation2 + $0x10] sm:$0xff] %v2118_v60  ;;  %vm1607_vm9 = vweird.f32 %v3207_v37  ;;  %v3243_v15 = vadd.f32 1.0, %v2488_v12  ;;  %vm1608_vm10 = vweird.f32 %v2486_v7 }
  0xeb   :  { %v2119_v61 = vmul.f32 0.9999998, %v2055_v11  ;;  %v1604_v14 = vsub.f32 1.0, %v1603_v3  ;;  %vm3245_vm11 = vcmp.eq.f32.partialorder %v1611_v1, 8.507059e+37  ;;  %v2395_v17 = vmul.f32 -1.442695, %v809_v10  ;;  %vm1609_vm13 = vmor %vm1607_vm9, %vm1608_vm10 }
  0xec   :  { %v2490_v47 = vpop.eup %2489  ;;  %v2364_v18 = vmul.f32 -1.442695, %v778_v55  ;;  %v1626_v33 = vand.u32 2147483647, %v3232_v6  ;;  %v1628_v19 = vand.u32 2147483648, %v3232_v6  ;;  %2495 = vrcp.f32 %v3243_v15 }
  0xed   :  { %2183 = vst [vmem:[#allocation2 + $0x18] sm:$0xff] %v2119_v61  ;;  %v1605_v8 = vmul.f32 %v2486_v7, %v1604_v14  ;;  %v1614_v21 = vor.u32 1.1754944e-38, %v1613_v5  ;;  %v3252_v24 = vadd.f32 1.0, %v2490_v47  ;;  %2497 = vpow2.f32 %v2395_v17 }
  0xee   :  { %v2492_v20 = vpop.eup %2491  ;;  %v779_v25 = vmul.f32 %v715_v13, %v413_v23  ;;  %vm1622_vm12 = vweird.f32 %v3232_v6  ;;  %2499 = vpow2.f32 %v2364_v18  ;;  %v1161_v30 = vand.u32 2147483647, %v3243_v15 }
  0xef   :  { %v1606_v27 = vadd.f32 %v2486_v7, %v1605_v8  ;;  %v3255_v28 = vadd.f32 1.0, %v2492_v20  ;;  %v2494_v29 = vpop.eup %2493  ;;  %v1163_v32 = vand.u32 2147483648, %v3243_v15  ;;  %2501 = vrcp.f32 %v3252_v24 }
  0xf0   :  { %v554_v34 = vunpack.c.3.s8 %v3087_v2  ;;  %v1618_v36 = vmul.f32 %v2494_v29, %v3232_v6  ;;  %vm3265_vm14 = vcmp.eq.f32.partialorder %v1626_v33, 8.507059e+37  ;;  %v1629_v38 = vor.u32 1.1754944e-38, %v1628_v19 }
  0xf1   :  { %v1610_v35 = vsel %vm1609_vm13, %v2486_v7, %v1606_v27  ;;  %v1178_v39 = vand.u32 2147483648, %v3252_v24  ;;  %2503 = vrcp.f32 %v3255_v28  ;;  %v2365_v40 = vmul.f32 -1.442695, %v779_v25 }
  0xf2   :  { %v1615_v37 = vsel %vm3245_vm11, %v1614_v21, %v1610_v35  ;;  %v2496_v41 = vpop.eup %2495  ;;  %v1619_v43 = vsub.f32 1.0, %v1618_v36  ;;  %vm1157_vm15 = vweird.f32 %v3243_v15  ;;  %v1176_v2 = vand.u32 2147483647, %v3252_v24 }
  0xf3   :  { %v2086_v42 = vadd.f32 1e-07, %v1615_v37  ;;  %v2498_v31 = vpop.eup %2497  ;;  %vm1623_vm0 = vweird.f32 %v2494_v29  ;;  %v1153_v44 = vmul.f32 %v2496_v41, %v3243_v15  ;;  %vm3276_vm1 = vcmp.eq.f32.partialorder %v1161_v30, 8.507059e+37 }
  0xf4   :  { %v1164_v48 = vor.u32 1.1754944e-38, %v1163_v32  ;;  %v1643_v46 = vand.u32 2147483648, %v3255_v28  ;;  %v2500_v49 = vpop.eup %2499  ;;  %v1620_v53 = vmul.f32 %v2494_v29, %v1619_v43  ;;  %v1641_v54 = vand.u32 2147483647, %v3255_v28  ;;  %vm1624_vm5 = vmor %vm1622_vm12, %vm1623_vm0 }
  0xf5   :  { %v2150_v52 = vmul.f32 0.9999998, %v2086_v42  ;;  %v3282_v56 = vadd.f32 1.0, %v2498_v31  ;;  %v2502_v57 = vpop.eup %2501  ;;  %v1154_v58 = vsub.f32 1.0, %v1153_v44  ;;  %vm1172_vm2 = vweird.f32 %v3252_v24  ;;  %v3341_v42 = vld [vmem:[%s4151_s0 + $0x10] sm:$0xff]  ;;  %v348_v44 = vpop.f32.mrf.mxu2 }
  0xf6   :  { %v1179_v59 = vor.u32 1.1754944e-38, %v1178_v39  ;;  %2505 = vpow2.f32 %v2365_v40  ;;  %v1621_v62 = vadd.f32 %v2494_v29, %v1620_v53  ;;  %v1168_v50 = vmul.f32 %v2502_v57, %v3252_v24  ;;  %v3350_v53 = vld [vmem:[%s4151_s0 + $0x18] sm:$0xff] }
  0xf7   :  { %2214 = vst [vmem:[#allocation2 + $0x110] sm:$0xff] %v2150_v52  ;;  %vm3286_vm3 = vcmp.eq.f32.partialorder %v1176_v2, 8.507059e+37  ;;  %vm1637_vm4 = vweird.f32 %v3255_v28  ;;  %2507 = vrcp.f32 %v3282_v56  ;;  %v3292_v22 = vadd.f32 1.0, %v2500_v49  ;;  %v2504_v63 = vpop.eup %2503 }
  0xf8   :  { %v1155_v0 = vmul.f32 %v2496_v41, %v1154_v58  ;;  %vm1158_vm6 = vweird.f32 %v2496_v41  ;;  %v1644_v1 = vor.u32 1.1754944e-38, %v1643_v46  ;;  %v1658_v7 = vand.u32 2147483648, %v3282_v56 }
  0xf9   :  { %v1625_v9 = vsel %vm1624_vm5, %v2494_v29, %v1621_v62  ;;  %v1169_v10 = vsub.f32 1.0, %v1168_v50  ;;  %v1633_v55 = vmul.f32 %v2504_v63, %v3255_v28  ;;  %vm3299_vm7 = vcmp.eq.f32.partialorder %v1641_v54, 8.507059e+37  ;;  %vm1159_vm9 = vmor %vm1157_vm15, %vm1158_vm6 }
  0xfa   :  { %v618_v11 = vcvt.s32.f32 %v554_v34  ;;  %v1630_v3 = vsel %vm3265_vm14, %v1629_v38, %v1625_v9  ;;  %v1156_v12 = vadd.f32 %v2496_v41, %v1155_v0  ;;  %vm1173_vm8 = vweird.f32 %v2502_v57 }
  0xfb   :  { %v1656_v6 = vand.u32 2147483647, %v3282_v56  ;;  %v2087_v5 = vadd.f32 1e-07, %v1630_v3  ;;  %v1170_v13 = vmul.f32 %v2502_v57, %v1169_v10  ;;  %v1634_v61 = vsub.f32 1.0, %v1633_v55  ;;  %vm1174_vm12 = vmor %vm1172_vm2, %vm1173_vm8 }
  0xfc   :  { %2509 = vrcp.f32 %v3292_v22  ;;  %v2506_v14 = vpop.eup %2505  ;;  %v1160_v23 = vsel %vm1159_vm9, %v2496_v41, %v1156_v12  ;;  %vm1638_vm10 = vweird.f32 %v2504_v63  ;;  %vm1652_vm11 = vweird.f32 %v3282_v56 }
  0xfd   :  { %v1659_v47 = vor.u32 1.1754944e-38, %v1658_v7  ;;  %v2508_v16 = vpop.eup %2507  ;;  %v2151_v17 = vmul.f32 0.9999998, %v2087_v5  ;;  %v1165_v18 = vsel %vm3276_vm1, %v1164_v48, %v1160_v23  ;;  %v1171_v8 = vadd.f32 %v2502_v57, %v1170_v13  ;;  %vm1639_vm15 = vmor %vm1637_vm4, %vm1638_vm10  ;;  %v303_v23 = vpop.f32.mrf.mxu0 }
  0xfe   :  { %v1635_v33 = vmul.f32 %v2504_v63, %v1634_v61  ;;  %v2056_v19 = vadd.f32 1e-07, %v1165_v18  ;;  %v1648_v15 = vmul.f32 %v2508_v16, %v3282_v56  ;;  %vm3316_vm13 = vcmp.eq.f32.partialorder %v1656_v6, 8.507059e+37  ;;  %v3362_v56 = vld [vmem:[%s4151_s0 + $0x50] sm:$0xff] }
  0xff   :  { %v1191_v21 = vand.u32 2147483647, %v3292_v22  ;;  %v1193_v25 = vand.u32 2147483648, %v3292_v22  ;;  %2215 = vst [vmem:[#allocation2 + $0x118] sm:$0xff] %v2151_v17  ;;  %v1175_v27 = vsel %vm1174_vm12, %v2502_v57, %v1171_v8  ;;  %vm1187_vm14 = vweird.f32 %v3292_v22 }
 0x100   :  { %v1636_v29 = vadd.f32 %v2504_v63, %v1635_v33  ;;  %v3323_v30 = vadd.f32 1.0, %v2506_v14  ;;  %v2120_v32 = vmul.f32 0.9999998, %v2056_v19  ;;  %v1180_v24 = vsel %vm3286_vm3, %v1179_v59, %v1175_v27 }
 0x101   :  { %v1649_v34 = vsub.f32 1.0, %v1648_v15  ;;  %v682_v35 = vmul.f32 0.5, %v618_v11  ;;  %v2057_v26 = vadd.f32 1e-07, %v1180_v24  ;;  %vm1653_vm0 = vweird.f32 %v2508_v16  ;;  %v461_v11 = vpop.f32.mrf.mxu3 }
 0x102   :  { %v2510_v36 = vpop.eup %2509  ;;  %v1640_v38 = vsel %vm1639_vm15, %v2504_v63, %v1636_v29  ;;  %2511 = vrcp.f32 %v3323_v30  ;;  %2184 = vst [vmem:[#allocation2 + $0x20] sm:$0xff] %v2120_v32  ;;  %vm3334_vm1 = vcmp.eq.f32.partialorder %v1191_v21, 8.507059e+37  ;;  %v1194_v28 = vor.u32 1.1754944e-38, %v1193_v25  ;;  %vm1654_vm3 = vmor %vm1652_vm11, %vm1653_vm0  ;;  %v416_v25 = vpop.f32.mrf.mxu1 }
 0x103   :  { %v1645_v37 = vsel %vm3299_vm7, %v1644_v1, %v1640_v38  ;;  %v1650_v39 = vmul.f32 %v2508_v16, %v1649_v34  ;;  %v1183_v40 = vmul.f32 %v2510_v36, %v3292_v22  ;;  %v2121_v43 = vmul.f32 0.9999998, %v2057_v26  ;;  %v351_v26 = vpop.f32.mrf.mxu2 }
 0x104   :  { %v2088_v2 = vadd.f32 1e-07, %v1645_v37  ;;  %v1206_v31 = vand.u32 2147483647, %v3323_v30  ;;  %v555_v45 = vunpack.c.3.s8 %v3092_v4  ;;  %vm1202_vm2 = vweird.f32 %v3323_v30 }
 0x105   :  { %v1651_v48 = vadd.f32 %v2508_v16, %v1650_v39  ;;  %v1184_v46 = vsub.f32 1.0, %v1183_v40  ;;  %v1208_v49 = vand.u32 2147483648, %v3323_v30  ;;  %v746_v52 = vadd.f32 1.0, %v682_v35  ;;  %2185 = vst [vmem:[#allocation2 + $0x28] sm:$0xff] %v2121_v43 }
 0x106   :  { %v2152_v54 = vmul.f32 0.9999998, %v2088_v2  ;;  %vm1188_vm4 = vweird.f32 %v2510_v36  ;;  %v619_v4 = vcvt.s32.f32 %v555_v45  ;;  %v524_v57 = vunpack.c.0.s8 %v3341_v42 }
 0x107   :  { %v1655_v58 = vsel %vm1654_vm3, %v2508_v16, %v1651_v48  ;;  %v1185_v59 = vmul.f32 %v2510_v36, %v1184_v46  ;;  %v1209_v62 = vor.u32 1.1754944e-38, %v1208_v49  ;;  %v810_v50 = vmul.f32 %v746_v52, %v348_v44  ;;  %vm1189_vm7 = vmor %vm1187_vm14, %vm1188_vm4  ;;  %v3376_v16 = vld [vmem:[%s4151_s0 + $0x58] sm:$0xff] }
 0x108   :  { %v2512_v51 = vpop.eup %2511  ;;  %2216 = vst [vmem:[#allocation2 + $0x120] sm:$0xff] %v2152_v54  ;;  %v1660_v63 = vsel %vm3316_vm13, %v1659_v47, %v1655_v58  ;;  %v683_v0 = vmul.f32 0.5, %v619_v4  ;;  %v588_v1 = vcvt.s32.f32 %v524_v57  ;;  %v525_v7 = vunpack.c.0.s8 %v3350_v53  ;;  %v306_v58 = vpop.f32.mrf.mxu0 }
 0x109   :  { %v2089_v9 = vadd.f32 1e-07, %v1660_v63  ;;  %v1186_v10 = vadd.f32 %v2510_v36, %v1185_v59  ;;  %v1198_v55 = vmul.f32 %v2512_v51, %v3323_v30  ;;  %vm1203_vm5 = vweird.f32 %v2512_v51  ;;  %v464_v49 = vpop.f32.mrf.mxu3 }
 0x10a   :  { %vm3365_vm6 = vcmp.eq.f32.partialorder %v1206_v31, 8.507059e+37  ;;  %v2396_v3 = vmul.f32 -1.442695, %v810_v50  ;;  %v747_v12 = vadd.f32 1.0, %v683_v0  ;;  %v652_v6 = vmul.f32 0.5, %v588_v1  ;;  %vm1204_vm8 = vmor %vm1202_vm2, %vm1203_vm5 }
 0x10b   :  { %v589_v5 = vcvt.s32.f32 %v525_v7  ;;  %v2153_v13 = vmul.f32 0.9999998, %v2089_v9  ;;  %v1190_v61 = vsel %vm1189_vm7, %v2510_v36, %v1186_v10  ;;  %v1199_v14 = vsub.f32 1.0, %v1198_v55 }
 0x10c   :  { %v556_v47 = vunpack.c.0.s8 %v3362_v56  ;;  %v1195_v17 = vsel %vm3334_vm1, %v1194_v28, %v1190_v61  ;;  %2513 = vpow2.f32 %v2396_v3  ;;  %v811_v22 = vmul.f32 %v747_v12, %v461_v11 }
 0x10d   :  { %v716_v18 = vadd.f32 1.0, %v652_v6  ;;  %2217 = vst [vmem:[#allocation2 + $0x128] sm:$0xff] %v2153_v13  ;;  %v2058_v8 = vadd.f32 1e-07, %v1195_v17  ;;  %v1200_v33 = vmul.f32 %v2512_v51, %v1199_v14  ;;  %v653_v19 = vmul.f32 0.5, %v589_v5 }
 0x10e   :  { %v620_v15 = vcvt.s32.f32 %v556_v47  ;;  %v2397_v20 = vmul.f32 -1.442695, %v811_v22  ;;  %v557_v27 = vunpack.c.0.s8 %v3376_v16  ;;  %v526_v29 = vunpack.c.1.s8 %v3341_v42  ;;  %v419_v22 = vpop.f32.mrf.mxu1 }
 0x10f   :  { %v780_v21 = vmul.f32 %v716_v18, %v303_v23  ;;  %v2122_v32 = vmul.f32 0.9999998, %v2058_v8  ;;  %v1201_v24 = vadd.f32 %v2512_v51, %v1200_v33  ;;  %v717_v34 = vadd.f32 1.0, %v653_v19 }
 0x110   :  { %v684_v35 = vmul.f32 0.5, %v620_v15  ;;  %2515 = vpow2.f32 %v2397_v20  ;;  %v621_v38 = vcvt.s32.f32 %v557_v27  ;;  %v590_v37 = vcvt.s32.f32 %v526_v29 }
 0x111   :  { %v2366_v36 = vmul.f32 -1.442695, %v780_v21  ;;  %2186 = vst [vmem:[#allocation2 + $0x30] sm:$0xff] %v2122_v32  ;;  %v1205_v39 = vsel %vm1204_vm8, %v2512_v51, %v1201_v24  ;;  %v781_v40 = vmul.f32 %v717_v34, %v416_v25  ;;  %v527_v28 = vunpack.c.1.s8 %v3350_v53 }
 0x112   :  { %v748_v41 = vadd.f32 1.0, %v684_v35  ;;  %v2514_v43 = vpop.eup %2513  ;;  %v1210_v2 = vsel %vm3365_vm6, %v1209_v62, %v1205_v39  ;;  %v685_v31 = vmul.f32 0.5, %v621_v38  ;;  %v654_v44 = vmul.f32 0.5, %v590_v37 }
 0x113   :  { %2517 = vpow2.f32 %v2366_v36  ;;  %v2059_v30 = vadd.f32 1e-07, %v1210_v2  ;;  %v3388_v45 = vadd.f32 1.0, %v2514_v43  ;;  %v2367_v48 = vmul.f32 -1.442695, %v781_v40  ;;  %v354_v43 = vpop.f32.mrf.mxu2 }
 0x114   :  { %v812_v46 = vmul.f32 %v748_v41, %v351_v26  ;;  %v749_v52 = vadd.f32 1.0, %v685_v31  ;;  %v718_v54 = vadd.f32 1.0, %v654_v44  ;;  %v591_v4 = vcvt.s32.f32 %v527_v28 }
 0x115   :  { %v2123_v57 = vmul.f32 0.9999998, %v2059_v30  ;;  %2519 = vrcp.f32 %v3388_v45  ;;  %v558_v59 = vunpack.c.1.s8 %v3362_v56  ;;  %v1671_v63 = vand.u32 2147483647, %v3388_v45 }
 0x116   :  { %v2516_v50 = vpop.eup %2515  ;;  %2521 = vpow2.f32 %v2367_v48  ;;  %v2398_v62 = vmul.f32 -1.442695, %v812_v46  ;;  %v813_v51 = vmul.f32 %v749_v52, %v464_v49  ;;  %v782_v9 = vmul.f32 %v718_v54, %v306_v58 }
 0x117   :  { %2187 = vst [vmem:[#allocation2 + $0x38] sm:$0xff] %v2123_v57  ;;  %v3393_v0 = vadd.f32 1.0, %v2516_v50  ;;  %v655_v10 = vmul.f32 0.5, %v591_v4  ;;  %v1673_v55 = vand.u32 2147483648, %v3388_v45  ;;  %v622_v60 = vcvt.s32.f32 %v558_v59 }
 0x118   :  { %2523 = vpow2.f32 %v2398_v62  ;;  %v2399_v7 = vmul.f32 -1.442695, %v813_v51  ;;  %vm1667_vm9 = vweird.f32 %v3388_v45  ;;  %vm3403_vm10 = vcmp.eq.f32.partialorder %v1671_v63, 8.507059e+37 }
 0x119   :  { %v2518_v1 = vpop.eup %2517  ;;  %2525 = vrcp.f32 %v3393_v0  ;;  %v1688_v11 = vand.u32 2147483648, %v3393_v0  ;;  %v1686_v6 = vand.u32 2147483647, %v3393_v0  ;;  %v2368_v14 = vmul.f32 -1.442695, %v782_v9 }
 0x11a   :  { %v3398_v3 = vadd.f32 1.0, %v2518_v1  ;;  %2527 = vpow2.f32 %v2399_v7  ;;  %v719_v23 = vadd.f32 1.0, %v655_v10  ;;  %v1674_v47 = vor.u32 1.1754944e-38, %v1673_v55 }
 0x11b   :  { %v2520_v12 = vpop.eup %2519  ;;  %v686_v18 = vmul.f32 0.5, %v622_v60  ;;  %v559_v8 = vunpack.c.1.s8 %v3376_v16  ;;  %vm1682_vm11 = vweird.f32 %v3393_v0  ;;  %v1689_v15 = vor.u32 1.1754944e-38, %v1688_v11 }
 0x11c   :  { %v2522_v5 = vpop.eup %2521  ;;  %v1663_v13 = vmul.f32 %v2520_v12, %v3388_v45  ;;  %2529 = vrcp.f32 %v3398_v3  ;;  %v1223_v20 = vand.u32 2147483648, %v3398_v3  ;;  %vm1668_vm12 = vweird.f32 %v2520_v12 }
 0x11d   :  { %v3408_v17 = vadd.f32 1.0, %v2522_v5  ;;  %vm1217_vm13 = vweird.f32 %v3398_v3  ;;  %v1221_v25 = vand.u32 2147483647, %v3398_v3  ;;  %vm3417_vm14 = vcmp.eq.f32.partialorder %v1686_v6, 8.507059e+37  ;;  %vm1669_vm15 = vmor %vm1667_vm9, %vm1668_vm12 }
 0x11e   :  { %v2524_v33 = vpop.eup %2523  ;;  %v1664_v19 = vsub.f32 1.0, %v1663_v13  ;;  %v783_v34 = vmul.f32 %v719_v23, %v419_v22  ;;  %v750_v26 = vadd.f32 1.0, %v686_v18  ;;  %v3425_v38 = vcvt.s32.f32 %v559_v8 }
 0x11f   :  { %v2526_v21 = vpop.eup %2525  ;;  %2531 = vrcp.f32 %v3408_v17  ;;  %v3421_v35 = vadd.f32 1.0, %v2524_v33  ;;  %v1224_v41 = vor.u32 1.1754944e-38, %v1223_v20  ;;  %v1236_v28 = vand.u32 2147483647, %v3408_v17 }
 0x120   :  { %v2528_v27 = vpop.eup %2527  ;;  %v1665_v29 = vmul.f32 %v2520_v12, %v1664_v19  ;;  %v1678_v32 = vmul.f32 %v2526_v21, %v3393_v0  ;;  %2533 = vpow2.f32 %v2368_v14  ;;  %vm3432_vm0 = vcmp.eq.f32.partialorder %v1221_v25, 8.507059e+37 }
 0x121   :  { %v3423_v36 = vadd.f32 1.0, %v2528_v27  ;;  %vm1232_vm1 = vweird.f32 %v3408_v17  ;;  %v1238_v44 = vand.u32 2147483648, %v3408_v17  ;;  %2535 = vrcp.f32 %v3421_v35 }
 0x122   :  { %v2530_v37 = vpop.eup %2529  ;;  %v1666_v39 = vadd.f32 %v2520_v12, %v1665_v29  ;;  %v1679_v40 = vsub.f32 1.0, %v1678_v32  ;;  %vm1683_vm2 = vweird.f32 %v2526_v21  ;;  %v2369_v46 = vmul.f32 -1.442695, %v783_v34 }
 0x123   :  { %v1213_v2 = vmul.f32 %v2530_v37, %v3398_v3  ;;  %2537 = vrcp.f32 %v3423_v36  ;;  %v814_v54 = vmul.f32 %v750_v26, %v354_v43  ;;  %vm3443_vm3 = vcmp.eq.f32.partialorder %v1236_v28, 8.507059e+37  ;;  %vm1684_vm4 = vmor %vm1682_vm11, %vm1683_vm2 }
 0x124   :  { %v1670_v30 = vsel %vm1669_vm15, %v2520_v12, %v1666_v39  ;;  %v1680_v48 = vmul.f32 %v2526_v21, %v1679_v40  ;;  %v1701_v62 = vand.u32 2147483647, %v3421_v35  ;;  %vm1218_vm5 = vweird.f32 %v2530_v37 }
 0x125   :  { %v2532_v49 = vpop.eup %2531  ;;  %v1675_v45 = vsel %vm3403_vm10, %v1674_v47, %v1670_v30  ;;  %v1214_v52 = vsub.f32 1.0, %v1213_v2  ;;  %v1239_v63 = vor.u32 1.1754944e-38, %v1238_v44  ;;  %v1703_v1 = vand.u32 2147483648, %v3421_v35  ;;  %vm1219_vm8 = vmor %vm1217_vm13, %vm1218_vm5  ;;  %v467_v30 = vpop.f32.mrf.mxu3 }
 0x126   :  { %v2534_v4 = vpop.eup %2533  ;;  %v2090_v57 = vadd.f32 1e-07, %v1675_v45  ;;  %v1681_v58 = vadd.f32 %v2526_v21, %v1680_v48  ;;  %v1228_v59 = vmul.f32 %v2532_v49, %v3408_v17  ;;  %vm1233_vm6 = vweird.f32 %v2532_v49 }
 0x127   :  { %v1215_v51 = vmul.f32 %v2530_v37, %v1214_v52  ;;  %vm1697_vm7 = vweird.f32 %v3421_v35  ;;  %v2536_v55 = vpop.eup %2535  ;;  %v1716_v12 = vand.u32 2147483647, %v3423_v36  ;;  %v3455_v0 = vadd.f32 1.0, %v2534_v4  ;;  %vm1234_vm11 = vmor %vm1232_vm1, %vm1233_vm6 }
 0x128   :  { %v2154_v7 = vmul.f32 0.9999998, %v2090_v57  ;;  %v1685_v9 = vsel %vm1684_vm4, %v2526_v21, %v1681_v58  ;;  %v1229_v10 = vsub.f32 1.0, %v1228_v59  ;;  %v1693_v13 = vmul.f32 %v2536_v55, %v3421_v35 }
 0x129   :  { %v1690_v60 = vsel %vm3417_vm14, %v1689_v15, %v1685_v9  ;;  %v1216_v11 = vadd.f32 %v2530_v37, %v1215_v51  ;;  %vm3461_vm9 = vcmp.eq.f32.partialorder %v1701_v62, 8.507059e+37  ;;  %v1718_v14 = vand.u32 2147483648, %v3423_v36  ;;  %v2538_v23 = vpop.eup %2537 }
 0x12a   :  { %2218 = vst [vmem:[#allocation2 + $0x130] sm:$0xff] %v2154_v7  ;;  %v2091_v6 = vadd.f32 1e-07, %v1690_v60  ;;  %v1230_v5 = vmul.f32 %v2532_v49, %v1229_v10  ;;  %v1704_v22 = vor.u32 1.1754944e-38, %v1703_v1  ;;  %vm1712_vm10 = vweird.f32 %v3423_v36  ;;  %v309_v10 = vpop.f32.mrf.mxu0 }
 0x12b   :  { %v1220_v47 = vsel %vm1219_vm8, %v2530_v37, %v1216_v11  ;;  %2539 = vrcp.f32 %v3455_v0  ;;  %v1694_v33 = vsub.f32 1.0, %v1693_v13  ;;  %vm1698_vm12 = vweird.f32 %v2536_v55 }
 0x12c   :  { %v2155_v18 = vmul.f32 0.9999998, %v2091_v6  ;;  %v1225_v3 = vsel %vm3432_vm0, %v1224_v41, %v1220_v47  ;;  %v1231_v8 = vadd.f32 %v2532_v49, %v1230_v5  ;;  %v1708_v15 = vmul.f32 %v2538_v23, %v3423_v36  ;;  %vm1699_vm0 = vmor %vm1697_vm7, %vm1698_vm12 }
 0x12d   :  { %v2060_v19 = vadd.f32 1e-07, %v1225_v3  ;;  %vm3474_vm13 = vcmp.eq.f32.partialorder %v1716_v12, 8.507059e+37  ;;  %v1695_v25 = vmul.f32 %v2536_v55, %v1694_v33  ;;  %vm1713_vm14 = vweird.f32 %v2538_v23  ;;  %v422_v3 = vpop.f32.mrf.mxu1 }
 0x12e   :  { %2219 = vst [vmem:[#allocation2 + $0x138] sm:$0xff] %v2155_v18  ;;  %v1235_v21 = vsel %vm1234_vm11, %v2532_v49, %v1231_v8  ;;  %v1719_v27 = vor.u32 1.1754944e-38, %v1718_v14  ;;  %v1709_v24 = vsub.f32 1.0, %v1708_v15  ;;  %2541 = vpow2.f32 %v2369_v46  ;;  %vm1714_vm1 = vmor %vm1712_vm10, %vm1713_vm14 }
 0x12f   :  { %v2124_v29 = vmul.f32 0.9999998, %v2060_v19  ;;  %v1240_v32 = vsel %vm3443_vm3, %v1239_v63, %v1235_v21  ;;  %v1696_v34 = vadd.f32 %v2536_v55, %v1695_v25  ;;  %vm1247_vm15 = vweird.f32 %v3455_v0 }
 0x130   :  { %v2061_v17 = vadd.f32 1e-07, %v1240_v32  ;;  %v1251_v26 = vand.u32 2147483647, %v3455_v0  ;;  %v1710_v39 = vmul.f32 %v2538_v23, %v1709_v24  ;;  %v2400_v40 = vmul.f32 -1.442695, %v814_v54 }
 0x131   :  { %v2540_v37 = vpop.eup %2539  ;;  %2188 = vst [vmem:[#allocation2 + $0x40] sm:$0xff] %v2124_v29  ;;  %v687_v41 = vmul.f32 0.5, %v3425_v38  ;;  %v528_v28 = vunpack.c.2.s8 %v3341_v42  ;;  %v1700_v2 = vsel %vm1699_vm0, %v2536_v55, %v1696_v34  ;;  %v1253_v44 = vand.u32 2147483648, %v3455_v0 }
 0x132   :  { %v2125_v43 = vmul.f32 0.9999998, %v2061_v17  ;;  %v1243_v31 = vmul.f32 %v2540_v37, %v3455_v0  ;;  %v1705_v48 = vsel %vm3461_vm9, %v1704_v22, %v1700_v2  ;;  %v1711_v46 = vadd.f32 %v2538_v23, %v1710_v39 }
 0x133   :  { %2543 = vpow2.f32 %v2400_v40  ;;  %v751_v35 = vadd.f32 1.0, %v687_v41  ;;  %v2092_v49 = vadd.f32 1e-07, %v1705_v48  ;;  %v592_v45 = vcvt.s32.f32 %v528_v28  ;;  %v357_v40 = vpop.f32.mrf.mxu2  ;;  %v470_v48 = vpop.f32.mrf.mxu3 }
 0x134   :  { %2189 = vst [vmem:[#allocation2 + $0x48] sm:$0xff] %v2125_v43  ;;  %v1244_v38 = vsub.f32 1.0, %v1243_v31  ;;  %v529_v52 = vunpack.c.2.s8 %v3350_v53  ;;  %v2542_v54 = vpop.eup %2541  ;;  %v1715_v4 = vsel %vm1714_vm1, %v2538_v23, %v1711_v46  ;;  %vm1248_vm2 = vweird.f32 %v2540_v37 }
 0x135   :  { %v815_v57 = vmul.f32 %v751_v35, %v467_v30  ;;  %v560_v58 = vunpack.c.2.s8 %v3362_v56  ;;  %v2156_v59 = vmul.f32 0.9999998, %v2092_v49  ;;  %v1720_v50 = vsel %vm3474_vm13, %v1719_v27, %v1715_v4  ;;  %vm1249_vm4 = vmor %vm1247_vm15, %vm1248_vm2 }
 0x136   :  { %v1245_v62 = vmul.f32 %v2540_v37, %v1244_v38  ;;  %v3498_v51 = vadd.f32 1.0, %v2542_v54  ;;  %v2093_v63 = vadd.f32 1e-07, %v1720_v50  ;;  %v656_v1 = vmul.f32 0.5, %v592_v45 }
 0x137   :  { %v2401_v36 = vmul.f32 -1.442695, %v815_v57  ;;  %v593_v7 = vcvt.s32.f32 %v529_v52  ;;  %2220 = vst [vmem:[#allocation2 + $0x140] sm:$0xff] %v2156_v59  ;;  %vm1252_vm3 = vcmp.eq.f32.partialorder %v1251_v26, 8.507059e+37  ;;  %v1254_v11 = vor.u32 1.1754944e-38, %v1253_v44 }
 0x138   :  { %v1246_v9 = vadd.f32 %v2540_v37, %v1245_v62  ;;  %2545 = vrcp.f32 %v3498_v51  ;;  %v2157_v60 = vmul.f32 0.9999998, %v2093_v63  ;;  %v720_v12 = vadd.f32 1.0, %v656_v1 }
 0x139   :  { %v2544_v55 = vpop.eup %2543  ;;  %2547 = vpow2.f32 %v2401_v36  ;;  %v657_v13 = vmul.f32 0.5, %v593_v7  ;;  %v561_v61 = vunpack.c.2.s8 %v3376_v16  ;;  %v624_v47 = vcvt.s32.f32 %v560_v58 }
 0x13a   :  { %v1250_v6 = vsel %vm1249_vm4, %v2540_v37, %v1246_v9  ;;  %v3504_v5 = vadd.f32 1.0, %v2544_v55  ;;  %2221 = vst [vmem:[#allocation2 + $0x148] sm:$0xff] %v2157_v60  ;;  %v784_v23 = vmul.f32 %v720_v12, %v309_v10  ;;  %v1266_v18 = vand.u32 2147483647, %v3498_v51 }
 0x13b   :  { %v1255_v14 = vsel %vm1252_vm3, %v1254_v11, %v1250_v6  ;;  %v721_v8 = vadd.f32 1.0, %v657_v13  ;;  %v688_v33 = vmul.f32 0.5, %v624_v47  ;;  %v1268_v20 = vand.u32 2147483648, %v3498_v51 }
 0x13c   :  { %v2062_v22 = vadd.f32 1e-07, %v1255_v14  ;;  %2549 = vrcp.f32 %v3504_v5  ;;  %v2370_v0 = vmul.f32 -1.442695, %v784_v23  ;;  %v625_v21 = vcvt.s32.f32 %v561_v61 }
 0x13d   :  { %v530_v25 = vunpack.c.3.s8 %v3341_v42  ;;  %v1731_v32 = vand.u32 2147483647, %v3504_v5  ;;  %v1733_v24 = vand.u32 2147483648, %v3504_v5  ;;  %v785_v34 = vmul.f32 %v721_v8, %v422_v3 }
 0x13e   :  { %v2546_v19 = vpop.eup %2545  ;;  %v2126_v15 = vmul.f32 0.9999998, %v2062_v22  ;;  %2551 = vpow2.f32 %v2370_v0  ;;  %v752_v26 = vadd.f32 1.0, %v688_v33  ;;  %v689_v37 = vmul.f32 0.5, %v625_v21 }
 0x13f   :  { %v2548_v27 = vpop.eup %2547  ;;  %v1258_v29 = vmul.f32 %v2546_v19, %v3498_v51  ;;  %vm1262_vm5 = vweird.f32 %v3498_v51  ;;  %v594_v41 = vcvt.s32.f32 %v530_v25  ;;  %vm3517_vm6 = vcmp.eq.f32.partialorder %v1266_v18, 8.507059e+37  ;;  %v312_v51 = vpop.f32.mrf.mxu0 }
 0x140   :  { %2190 = vst [vmem:[#allocation2 + $0x50] sm:$0xff] %v2126_v15  ;;  %v3514_v17 = vadd.f32 1.0, %v2548_v27  ;;  %v1269_v43 = vor.u32 1.1754944e-38, %v1268_v20  ;;  %vm1727_vm7 = vweird.f32 %v3504_v5  ;;  %vm1263_vm8 = vweird.f32 %v2546_v19  ;;  %v425_v27 = vpop.f32.mrf.mxu1 }
 0x141   :  { %v1259_v39 = vsub.f32 1.0, %v1258_v29  ;;  %vm3524_vm9 = vcmp.eq.f32.partialorder %v1731_v32, 8.507059e+37  ;;  %v2371_v30 = vmul.f32 -1.442695, %v785_v34  ;;  %v1734_v46 = vor.u32 1.1754944e-38, %v1733_v24  ;;  %vm1264_vm10 = vmor %vm1262_vm5, %vm1263_vm8 }
 0x142   :  { %v2550_v42 = vpop.eup %2549  ;;  %2553 = vrcp.f32 %v3514_v17  ;;  %v816_v35 = vmul.f32 %v752_v26, %v357_v40  ;;  %v753_v49 = vadd.f32 1.0, %v689_v37  ;;  %v531_v38 = vunpack.c.3.s8 %v3350_v53 }
 0x143   :  { %v1260_v2 = vmul.f32 %v2546_v19, %v1259_v39  ;;  %v1723_v31 = vmul.f32 %v2550_v42, %v3504_v5  ;;  %2555 = vpow2.f32 %v2371_v30  ;;  %v658_v4 = vmul.f32 0.5, %v594_v41 }
 0x144   :  { %v2552_v45 = vpop.eup %2551  ;;  %v2402_v58 = vmul.f32 -1.442695, %v816_v35  ;;  %v817_v59 = vmul.f32 %v753_v49, %v470_v48  ;;  %v562_v50 = vunpack.c.3.s8 %v3362_v56  ;;  %vm1728_vm11 = vweird.f32 %v2550_v42  ;;  %v3576_v35 = vld [vmem:[%s4151_s0 + $0x20] sm:$0xff] }
 0x145   :  { %v1261_v52 = vadd.f32 %v2546_v19, %v1260_v2  ;;  %v1724_v54 = vsub.f32 1.0, %v1723_v31  ;;  %v3531_v57 = vadd.f32 1.0, %v2552_v45  ;;  %v722_v36 = vadd.f32 1.0, %v658_v4  ;;  %vm1729_vm13 = vmor %vm1727_vm7, %vm1728_vm11 }
 0x146   :  { %vm1742_vm12 = vweird.f32 %v3514_v17  ;;  %v1746_v7 = vand.u32 2147483647, %v3514_v17  ;;  %v595_v56 = vcvt.s32.f32 %v531_v38  ;;  %v1748_v60 = vand.u32 2147483648, %v3514_v17 }
 0x147   :  { %v1265_v62 = vsel %vm1264_vm10, %v2546_v19, %v1261_v52  ;;  %v1725_v63 = vmul.f32 %v2550_v42, %v1724_v54  ;;  %2557 = vrcp.f32 %v3531_v57  ;;  %v1281_v11 = vand.u32 2147483647, %v3531_v57 }
 0x148   :  { %v2554_v1 = vpop.eup %2553  ;;  %v1270_v53 = vsel %vm3517_vm6, %v1269_v43, %v1265_v62  ;;  %2559 = vpow2.f32 %v2402_v58  ;;  %v2403_v12 = vmul.f32 -1.442695, %v817_v59  ;;  %v786_v23 = vmul.f32 %v722_v36, %v312_v51 }
 0x149   :  { %v2063_v9 = vadd.f32 1e-07, %v1270_v53  ;;  %v1726_v10 = vadd.f32 %v2550_v42, %v1725_v63  ;;  %v1738_v55 = vmul.f32 %v2554_v1, %v3514_v17  ;;  %v2556_v6 = vpop.eup %2555  ;;  %vm1743_vm14 = vweird.f32 %v2554_v1 }
 0x14a   :  { %v3546_v22 = vadd.f32 1.0, %v2556_v6  ;;  %2561 = vpow2.f32 %v2403_v12  ;;  %v2372_v0 = vmul.f32 -1.442695, %v786_v23  ;;  %v659_v3 = vmul.f32 0.5, %v595_v56  ;;  %vm1744_vm0 = vmor %vm1742_vm12, %vm1743_vm14 }
 0x14b   :  { %v2127_v13 = vmul.f32 0.9999998, %v2063_v9  ;;  %v1730_v61 = vsel %vm1729_vm13, %v2550_v42, %v1726_v10  ;;  %v1739_v14 = vsub.f32 1.0, %v1738_v55  ;;  %vm3548_vm15 = vcmp.eq.f32.partialorder %v1746_v7, 8.507059e+37  ;;  %v360_v55 = vpop.f32.mrf.mxu2 }
 0x14c   :  { %v1735_v47 = vsel %vm3524_vm9, %v1734_v46, %v1730_v61  ;;  %v1749_v19 = vor.u32 1.1754944e-38, %v1748_v60  ;;  %v1283_v15 = vand.u32 2147483648, %v3531_v57  ;;  %2563 = vrcp.f32 %v3546_v22 }
 0x14d   :  { %2191 = vst [vmem:[#allocation2 + $0x58] sm:$0xff] %v2127_v13  ;;  %v2094_v5 = vadd.f32 1e-07, %v1735_v47  ;;  %v1740_v18 = vmul.f32 %v2554_v1, %v1739_v14  ;;  %v2558_v8 = vpop.eup %2557  ;;  %v626_v29 = vcvt.s32.f32 %v562_v50  ;;  %vm1277_vm1 = vweird.f32 %v3531_v57 }
 0x14e   :  { %v1273_v25 = vmul.f32 %v2558_v8, %v3531_v57  ;;  %v2560_v32 = vpop.eup %2559  ;;  %vm3559_vm2 = vcmp.eq.f32.partialorder %v1281_v11, 8.507059e+37  ;;  %2565 = vpow2.f32 %v2372_v0  ;;  %v723_v34 = vadd.f32 1.0, %v659_v3 }
 0x14f   :  { %v2158_v20 = vmul.f32 0.9999998, %v2094_v5  ;;  %v1741_v21 = vadd.f32 %v2554_v1, %v1740_v18  ;;  %v1296_v39 = vand.u32 2147483647, %v3546_v22  ;;  %v3564_v40 = vadd.f32 1.0, %v2560_v32 }
 0x150   :  { %v1274_v37 = vsub.f32 1.0, %v1273_v25  ;;  %v2562_v41 = vpop.eup %2561  ;;  %v1284_v42 = vor.u32 1.1754944e-38, %v1283_v15  ;;  %v1298_v28 = vand.u32 2147483648, %v3546_v22  ;;  %v787_v43 = vmul.f32 %v723_v34, %v425_v27  ;;  %v3617_v15 = vld [vmem:[%s4151_s0 + $0x28] sm:$0xff] }
 0x151   :  { %2222 = vst [vmem:[#allocation2 + $0x150] sm:$0xff] %v2158_v20  ;;  %v1745_v26 = vsel %vm1744_vm0, %v2554_v1, %v1741_v21  ;;  %vm1278_vm3 = vweird.f32 %v2558_v8  ;;  %2567 = vrcp.f32 %v3564_v40  ;;  %vm1292_vm4 = vweird.f32 %v3546_v22 }
 0x152   :  { %v1750_v17 = vsel %vm3548_vm15, %v1749_v19, %v1745_v26  ;;  %v1275_v31 = vmul.f32 %v2558_v8, %v1274_v37  ;;  %v2564_v44 = vpop.eup %2563  ;;  %v3571_v30 = vadd.f32 1.0, %v2562_v41  ;;  %v2373_v48 = vmul.f32 -1.442695, %v787_v43  ;;  %vm1279_vm6 = vmor %vm1277_vm1, %vm1278_vm3 }
 0x153   :  { %v2095_v2 = vadd.f32 1e-07, %v1750_v17  ;;  %v690_v46 = vmul.f32 0.5, %v626_v29  ;;  %v1288_v45 = vmul.f32 %v2564_v44, %v3546_v22  ;;  %vm3579_vm5 = vcmp.eq.f32.partialorder %v1296_v39, 8.507059e+37 }
 0x154   :  { %v1276_v38 = vadd.f32 %v2558_v8, %v1275_v31  ;;  %v2566_v54 = vpop.eup %2565  ;;  %v1299_v4 = vor.u32 1.1754944e-38, %v1298_v28  ;;  %v1761_v58 = vand.u32 2147483647, %v3564_v40  ;;  %v1763_v59 = vand.u32 2147483648, %v3564_v40  ;;  %v315_v31 = vpop.f32.mrf.mxu0 }
 0x155   :  { %v2159_v49 = vmul.f32 0.9999998, %v2095_v2  ;;  %2569 = vrcp.f32 %v3571_v30  ;;  %v1289_v62 = vsub.f32 1.0, %v1288_v45  ;;  %v563_v63 = vunpack.c.3.s8 %v3376_v16  ;;  %v473_v2 = vpop.f32.mrf.mxu3 }
 0x156   :  { %v1280_v50 = vsel %vm1279_vm6, %v2558_v8, %v1276_v38  ;;  %v532_v36 = vunpack.c.0.s8 %v3576_v35  ;;  %vm1757_vm7 = vweird.f32 %v3564_v40  ;;  %v3593_v57 = vadd.f32 1.0, %v2566_v54  ;;  %v3641_v54 = vld [vmem:[%s4151_s0 + $0x60] sm:$0xff] }
 0x157   :  { %2223 = vst [vmem:[#allocation2 + $0x158] sm:$0xff] %v2159_v49  ;;  %v1285_v1 = vsel %vm3559_vm2, %v1284_v42, %v1280_v50  ;;  %2571 = vpow2.f32 %v2373_v48  ;;  %v754_v53 = vadd.f32 1.0, %v690_v46  ;;  %v2568_v7 = vpop.eup %2567  ;;  %v1290_v9 = vmul.f32 %v2564_v44, %v1289_v62  ;;  %v3648_v62 = vld [vmem:[%s4151_s0 + $0x68] sm:$0xff] }
 0x158   :  { %v2064_v51 = vadd.f32 1e-07, %v1285_v1  ;;  %vm1293_vm8 = vweird.f32 %v2564_v44  ;;  %v1776_v10 = vand.u32 2147483647, %v3571_v30  ;;  %v1753_v16 = vmul.f32 %v2568_v7, %v3564_v40 }
 0x159   :  { %vm3597_vm9 = vcmp.eq.f32.partialorder %v1761_v58, 8.507059e+37  ;;  %v1764_v60 = vor.u32 1.1754944e-38, %v1763_v59  ;;  %2573 = vrcp.f32 %v3593_v57  ;;  %v1291_v12 = vadd.f32 %v2564_v44, %v1290_v9  ;;  %vm1294_vm11 = vmor %vm1292_vm4, %vm1293_vm8 }
 0x15a   :  { %v2128_v11 = vmul.f32 0.9999998, %v2064_v51  ;;  %vm1772_vm10 = vweird.f32 %v3571_v30  ;;  %v1778_v6 = vand.u32 2147483648, %v3571_v30  ;;  %v1754_v61 = vsub.f32 1.0, %v1753_v16 }
 0x15b   :  { %v2570_v13 = vpop.eup %2569  ;;  %v818_v14 = vmul.f32 %v754_v53, %v360_v55  ;;  %v627_v23 = vcvt.s32.f32 %v563_v63  ;;  %v596_v47 = vcvt.s32.f32 %v532_v36  ;;  %v1295_v5 = vsel %vm1294_vm11, %v2564_v44, %v1291_v12 }
 0x15c   :  { %2192 = vst [vmem:[#allocation2 + $0x60] sm:$0xff] %v2128_v11  ;;  %vm1758_vm12 = vweird.f32 %v2568_v7  ;;  %v1768_v18 = vmul.f32 %v2570_v13, %v3571_v30  ;;  %vm3607_vm13 = vcmp.eq.f32.partialorder %v1776_v10, 8.507059e+37  ;;  %v1300_v8 = vsel %vm3579_vm5, %v1299_v4, %v1295_v5 }
 0x15d   :  { %v2572_v3 = vpop.eup %2571  ;;  %v1755_v33 = vmul.f32 %v2568_v7, %v1754_v61  ;;  %v1311_v22 = vand.u32 2147483647, %v3593_v57  ;;  %v2404_v19 = vmul.f32 -1.442695, %v818_v14  ;;  %v2065_v20 = vadd.f32 1e-07, %v1300_v8  ;;  %vm1759_vm15 = vmor %vm1757_vm7, %vm1758_vm12  ;;  %v428_v14 = vpop.f32.mrf.mxu1 }
 0x15e   :  { %v1769_v21 = vsub.f32 1.0, %v1768_v18  ;;  %vm1773_vm14 = vweird.f32 %v2570_v13  ;;  %v3619_v25 = vadd.f32 1.0, %v2572_v3  ;;  %v691_v32 = vmul.f32 0.5, %v627_v23 }
 0x15f   :  { %v2574_v27 = vpop.eup %2573  ;;  %v1756_v29 = vadd.f32 %v2568_v7, %v1755_v33  ;;  %2575 = vpow2.f32 %v2404_v19  ;;  %v660_v24 = vmul.f32 0.5, %v596_v47  ;;  %v2129_v34 = vmul.f32 0.9999998, %v2065_v20  ;;  %vm1774_vm1 = vmor %vm1772_vm10, %vm1773_vm14 }
 0x160   :  { %v1770_v26 = vmul.f32 %v2570_v13, %v1769_v21  ;;  %v1303_v37 = vmul.f32 %v2574_v27, %v3593_v57  ;;  %v533_v39 = vunpack.c.0.s8 %v3617_v15  ;;  %v1779_v17 = vor.u32 1.1754944e-38, %v1778_v6 }
 0x161   :  { %v1760_v41 = vsel %vm1759_vm15, %v2568_v7, %v1756_v29  ;;  %vm1307_vm0 = vweird.f32 %v3593_v57  ;;  %2577 = vrcp.f32 %v3619_v25  ;;  %2193 = vst [vmem:[#allocation2 + $0x68] sm:$0xff] %v2129_v34  ;;  %v1313_v40 = vand.u32 2147483648, %v3593_v57 }
 0x162   :  { %v1765_v42 = vsel %vm3597_vm9, %v1764_v60, %v1760_v41  ;;  %v1771_v28 = vadd.f32 %v2570_v13, %v1770_v26  ;;  %v1304_v43 = vsub.f32 1.0, %v1303_v37  ;;  %vm3634_vm2 = vcmp.eq.f32.partialorder %v1311_v22, 8.507059e+37  ;;  %v476_v37 = vpop.f32.mrf.mxu3 }
 0x163   :  { %v2096_v44 = vadd.f32 1e-07, %v1765_v42  ;;  %v755_v46 = vadd.f32 1.0, %v691_v32  ;;  %v724_v49 = vadd.f32 1.0, %v660_v24  ;;  %vm1308_vm3 = vweird.f32 %v2574_v27 }
 0x164   :  { %v1775_v38 = vsel %vm1774_vm1, %v2570_v13, %v1771_v28  ;;  %v1305_v45 = vmul.f32 %v2574_v27, %v1304_v43  ;;  %v597_v52 = vcvt.s32.f32 %v533_v39  ;;  %v1314_v1 = vor.u32 1.1754944e-38, %v1313_v40  ;;  %vm1309_vm4 = vmor %vm1307_vm0, %vm1308_vm3 }
 0x165   :  { %v2576_v4 = vpop.eup %2575  ;;  %v2160_v58 = vmul.f32 0.9999998, %v2096_v44  ;;  %v1780_v30 = vsel %vm3607_vm13, %v1779_v17, %v1775_v38  ;;  %v819_v59 = vmul.f32 %v755_v46, %v473_v2  ;;  %v788_v50 = vmul.f32 %v724_v49, %v315_v31  ;;  %v431_v3 = vpop.f32.mrf.mxu1 }
 0x166   :  { %v2097_v63 = vadd.f32 1e-07, %v1780_v30  ;;  %v1306_v36 = vadd.f32 %v2574_v27, %v1305_v45  ;;  %v3650_v53 = vadd.f32 1.0, %v2576_v4  ;;  %v661_v10 = vmul.f32 0.5, %v597_v52 }
 0x167   :  { %v2578_v7 = vpop.eup %2577  ;;  %2224 = vst [vmem:[#allocation2 + $0x160] sm:$0xff] %v2160_v58  ;;  %v2405_v51 = vmul.f32 -1.442695, %v819_v59  ;;  %v2374_v9 = vmul.f32 -1.442695, %v788_v50  ;;  %v564_v55 = vunpack.c.0.s8 %v3641_v54  ;;  %v565_v11 = vunpack.c.0.s8 %v3648_v62 }
 0x168   :  { %v2161_v16 = vmul.f32 0.9999998, %v2097_v63  ;;  %v1310_v56 = vsel %vm1309_vm4, %v2574_v27, %v1306_v36  ;;  %v1318_v60 = vmul.f32 %v2578_v7, %v3619_v25  ;;  %v1326_v6 = vand.u32 2147483647, %v3619_v25  ;;  %v363_v27 = vpop.f32.mrf.mxu2 }
 0x169   :  { %v1315_v12 = vsel %vm3634_vm2, %v1314_v1, %v1310_v56  ;;  %2579 = vrcp.f32 %v3650_v53  ;;  %v1328_v61 = vand.u32 2147483648, %v3619_v25  ;;  %vm1322_vm5 = vweird.f32 %v3619_v25 }
 0x16a   :  { %2225 = vst [vmem:[#allocation2 + $0x168] sm:$0xff] %v2161_v16  ;;  %v2066_v57 = vadd.f32 1e-07, %v1315_v12  ;;  %v1319_v13 = vsub.f32 1.0, %v1318_v60  ;;  %2581 = vpow2.f32 %v2405_v51  ;;  %v725_v23 = vadd.f32 1.0, %v661_v10 }
 0x16b   :  { %2583 = vpow2.f32 %v2374_v9  ;;  %v628_v47 = vcvt.s32.f32 %v564_v55  ;;  %vm1323_vm6 = vweird.f32 %v2578_v7  ;;  %v629_v0 = vcvt.s32.f32 %v565_v11 }
 0x16c   :  { %v2130_v5 = vmul.f32 0.9999998, %v2066_v57  ;;  %v1320_v18 = vmul.f32 %v2578_v7, %v1319_v13  ;;  %vm3664_vm7 = vcmp.eq.f32.partialorder %v1326_v6, 8.507059e+37  ;;  %v789_v8 = vmul.f32 %v725_v23, %v428_v14  ;;  %vm1324_vm8 = vmor %vm1322_vm5, %vm1323_vm6  ;;  %v318_v57 = vpop.f32.mrf.mxu0 }
 0x16d   :  { %v692_v33 = vmul.f32 0.5, %v628_v47  ;;  %v534_v22 = vunpack.c.1.s8 %v3576_v35  ;;  %v1329_v20 = vor.u32 1.1754944e-38, %v1328_v61  ;;  %v1791_v21 = vand.u32 2147483647, %v3650_v53 }
 0x16e   :  { %2194 = vst [vmem:[#allocation2 + $0x70] sm:$0xff] %v2130_v5  ;;  %v1321_v19 = vadd.f32 %v2578_v7, %v1320_v18  ;;  %v693_v29 = vmul.f32 0.5, %v629_v0  ;;  %v1793_v24 = vand.u32 2147483648, %v3650_v53  ;;  %v2375_v34 = vmul.f32 -1.442695, %v789_v8 }
 0x16f   :  { %v2580_v32 = vpop.eup %2579  ;;  %v756_v26 = vadd.f32 1.0, %v692_v33  ;;  %v535_v39 = vunpack.c.1.s8 %v3617_v15  ;;  %v598_v43 = vcvt.s32.f32 %v534_v22  ;;  %vm1787_vm9 = vweird.f32 %v3650_v53 }
 0x170   :  { %v2582_v41 = vpop.eup %2581  ;;  %v1325_v17 = vsel %vm1324_vm8, %v2578_v7, %v1321_v19  ;;  %v1783_v42 = vmul.f32 %v2580_v32, %v3650_v53  ;;  %v757_v28 = vadd.f32 1.0, %v693_v29  ;;  %2585 = vpow2.f32 %v2375_v34 }
 0x171   :  { %v2584_v40 = vpop.eup %2583  ;;  %v1330_v2 = vsel %vm3664_vm7, %v1329_v20, %v1325_v17  ;;  %v3677_v31 = vadd.f32 1.0, %v2582_v41  ;;  %v820_v25 = vmul.f32 %v756_v26, %v363_v27  ;;  %v599_v38 = vcvt.s32.f32 %v535_v39  ;;  %v366_v17 = vpop.f32.mrf.mxu2 }
 0x172   :  { %v2067_v44 = vadd.f32 1e-07, %v1330_v2  ;;  %v1784_v48 = vsub.f32 1.0, %v1783_v42  ;;  %v3679_v46 = vadd.f32 1.0, %v2584_v40  ;;  %v821_v49 = vmul.f32 %v757_v28, %v476_v37 }
 0x173   :  { %2587 = vrcp.f32 %v3677_v31  ;;  %v566_v45 = vunpack.c.1.s8 %v3641_v54  ;;  %vm1788_vm10 = vweird.f32 %v2580_v32  ;;  %vm3685_vm11 = vcmp.eq.f32.partialorder %v1791_v21, 8.507059e+37 }
 0x174   :  { %v2131_v52 = vmul.f32 0.9999998, %v2067_v44  ;;  %v1785_v4 = vmul.f32 %v2580_v32, %v1784_v48  ;;  %2589 = vrcp.f32 %v3679_v46  ;;  %v1794_v30 = vor.u32 1.1754944e-38, %v1793_v24  ;;  %vm1789_vm12 = vmor %vm1787_vm9, %vm1788_vm10 }
 0x175   :  { %v1806_v59 = vand.u32 2147483647, %v3677_v31  ;;  %v567_v50 = vunpack.c.1.s8 %v3648_v62  ;;  %v2406_v36 = vmul.f32 -1.442695, %v820_v25  ;;  %v2407_v1 = vmul.f32 -1.442695, %v821_v49 }
 0x176   :  { %2195 = vst [vmem:[#allocation2 + $0x78] sm:$0xff] %v2131_v52  ;;  %v1786_v63 = vadd.f32 %v2580_v32, %v1785_v4  ;;  %v662_v7 = vmul.f32 0.5, %v598_v43  ;;  %v2586_v51 = vpop.eup %2585  ;;  %v1808_v9 = vand.u32 2147483648, %v3677_v31  ;;  %v1341_v10 = vand.u32 2147483647, %v3679_v46 }
 0x177   :  { %v663_v55 = vmul.f32 0.5, %v599_v38  ;;  %v630_v16 = vcvt.s32.f32 %v566_v45  ;;  %vm1802_vm13 = vweird.f32 %v3677_v31  ;;  %v3696_v60 = vadd.f32 1.0, %v2586_v51 }
 0x178   :  { %v1790_v56 = vsel %vm1789_vm12, %v2580_v32, %v1786_v63  ;;  %2591 = vpow2.f32 %v2406_v36  ;;  %v726_v11 = vadd.f32 1.0, %v662_v7  ;;  %v1343_v53 = vand.u32 2147483648, %v3679_v46 }
 0x179   :  { %v2588_v12 = vpop.eup %2587  ;;  %v1795_v6 = vsel %vm3685_vm11, %v1794_v30, %v1790_v56  ;;  %2593 = vpow2.f32 %v2407_v1  ;;  %v727_v13 = vadd.f32 1.0, %v663_v55  ;;  %v694_v47 = vmul.f32 0.5, %v630_v16 }
 0x17a   :  { %v2590_v61 = vpop.eup %2589  ;;  %v2098_v14 = vadd.f32 1e-07, %v1795_v6  ;;  %v1798_v23 = vmul.f32 %v2588_v12, %v3677_v31  ;;  %2595 = vrcp.f32 %v3696_v60  ;;  %vm3703_vm14 = vcmp.eq.f32.partialorder %v1806_v59, 8.507059e+37 }
 0x17b   :  { %v1809_v18 = vor.u32 1.1754944e-38, %v1808_v9  ;;  %v1333_v0 = vmul.f32 %v2590_v61, %v3679_v46  ;;  %vm1337_vm15 = vweird.f32 %v3679_v46  ;;  %vm3709_vm0 = vcmp.eq.f32.partialorder %v1341_v10, 8.507059e+37 }
 0x17c   :  { %v2162_v8 = vmul.f32 0.9999998, %v2098_v14  ;;  %v1799_v33 = vsub.f32 1.0, %v1798_v23  ;;  %v790_v19 = vmul.f32 %v726_v11, %v318_v57  ;;  %vm1803_vm1 = vweird.f32 %v2588_v12 }
 0x17d   :  { %v1334_v20 = vsub.f32 1.0, %v1333_v0  ;;  %v1344_v21 = vor.u32 1.1754944e-38, %v1343_v53  ;;  %v1356_v27 = vand.u32 2147483647, %v3696_v60  ;;  %v791_v34 = vmul.f32 %v727_v13, %v431_v3  ;;  %vm1804_vm4 = vmor %vm1802_vm13, %vm1803_vm1 }
 0x17e   :  { %v2592_v29 = vpop.eup %2591  ;;  %2226 = vst [vmem:[#allocation2 + $0x170] sm:$0xff] %v2162_v8  ;;  %v1800_v32 = vmul.f32 %v2588_v12, %v1799_v33  ;;  %v2376_v24 = vmul.f32 -1.442695, %v790_v19  ;;  %v758_v26 = vadd.f32 1.0, %v694_v47  ;;  %vm1338_vm2 = vweird.f32 %v2590_v61 }
 0x17f   :  { %v2594_v37 = vpop.eup %2593  ;;  %v1335_v39 = vmul.f32 %v2590_v61, %v1334_v20  ;;  %vm1352_vm3 = vweird.f32 %v3696_v60  ;;  %v3715_v41 = vadd.f32 1.0, %v2592_v29  ;;  %v1358_v43 = vand.u32 2147483648, %v3696_v60  ;;  %vm1339_vm6 = vmor %vm1337_vm15, %vm1338_vm2 }
 0x180   :  { %v2596_v42 = vpop.eup %2595  ;;  %v1801_v28 = vadd.f32 %v2588_v12, %v1800_v32  ;;  %v3718_v40 = vadd.f32 1.0, %v2594_v37  ;;  %2597 = vpow2.f32 %v2376_v24  ;;  %vm3724_vm5 = vcmp.eq.f32.partialorder %v1356_v27, 8.507059e+37 }
 0x181   :  { %v1336_v2 = vadd.f32 %v2590_v61, %v1335_v39  ;;  %v1348_v25 = vmul.f32 %v2596_v42, %v3696_v60  ;;  %2599 = vrcp.f32 %v3715_v41  ;;  %v2377_v49 = vmul.f32 -1.442695, %v791_v34 }
 0x182   :  { %v1805_v48 = vsel %vm1804_vm4, %v2588_v12, %v1801_v28  ;;  %v822_v38 = vmul.f32 %v758_v26, %v366_v17  ;;  %v631_v31 = vcvt.s32.f32 %v567_v50  ;;  %2601 = vrcp.f32 %v3718_v40 }
 0x183   :  { %v1810_v45 = vsel %vm3703_vm14, %v1809_v18, %v1805_v48  ;;  %v1340_v52 = vsel %vm1339_vm6, %v2590_v61, %v1336_v2  ;;  %v1349_v4 = vsub.f32 1.0, %v1348_v25  ;;  %v1821_v59 = vand.u32 2147483647, %v3715_v41  ;;  %v479_v18 = vpop.f32.mrf.mxu3 }
 0x184   :  { %v2099_v58 = vadd.f32 1e-07, %v1810_v45  ;;  %v1345_v30 = vsel %vm3709_vm0, %v1344_v21, %v1340_v52  ;;  %v1823_v46 = vand.u32 2147483648, %v3715_v41  ;;  %vm1353_vm7 = vweird.f32 %v2596_v42 }
 0x185   :  { %v2068_v63 = vadd.f32 1e-07, %v1345_v30  ;;  %v1350_v36 = vmul.f32 %v2596_v42, %v1349_v4  ;;  %v1359_v1 = vor.u32 1.1754944e-38, %v1358_v43  ;;  %2603 = vpow2.f32 %v2377_v49  ;;  %vm1354_vm9 = vmor %vm1352_vm3, %vm1353_vm7 }
 0x186   :  { %v2598_v50 = vpop.eup %2597  ;;  %v2163_v7 = vmul.f32 0.9999998, %v2099_v58  ;;  %v2408_v51 = vmul.f32 -1.442695, %v822_v38  ;;  %v695_v9 = vmul.f32 0.5, %v631_v31  ;;  %vm1817_vm8 = vweird.f32 %v3715_v41 }
 0x187   :  { %v2600_v10 = vpop.eup %2599  ;;  %v2132_v55 = vmul.f32 0.9999998, %v2068_v63  ;;  %v1351_v16 = vadd.f32 %v2596_v42, %v1350_v36  ;;  %v3742_v56 = vadd.f32 1.0, %v2598_v50  ;;  %vm3747_vm10 = vcmp.eq.f32.partialorder %v1821_v59, 8.507059e+37 }
 0x188   :  { %2227 = vst [vmem:[#allocation2 + $0x178] sm:$0xff] %v2163_v7  ;;  %v1813_v11 = vmul.f32 %v2600_v10, %v3715_v41  ;;  %v1824_v6 = vor.u32 1.1754944e-38, %v1823_v46  ;;  %2605 = vpow2.f32 %v2408_v51  ;;  %v2602_v53 = vpop.eup %2601  ;;  %v1836_v13 = vand.u32 2147483647, %v3718_v40 }
 0x189   :  { %2196 = vst [vmem:[#allocation2 + $0x80] sm:$0xff] %v2132_v55  ;;  %v1355_v57 = vsel %vm1354_vm9, %v2596_v42, %v1351_v16  ;;  %v1838_v61 = vand.u32 2147483648, %v3718_v40  ;;  %2607 = vrcp.f32 %v3742_v56  ;;  %v1828_v23 = vmul.f32 %v2602_v53, %v3718_v40  ;;  %v321_v55 = vpop.f32.mrf.mxu0  ;;  %v434_v16 = vpop.f32.mrf.mxu1 }
 0x18a   :  { %v1360_v60 = vsel %vm3724_vm5, %v1359_v1, %v1355_v57  ;;  %v1814_v14 = vsub.f32 1.0, %v1813_v11  ;;  %vm1832_vm11 = vweird.f32 %v3718_v40  ;;  %vm1818_vm12 = vweird.f32 %v2600_v10 }
 0x18b   :  { %v2069_v47 = vadd.f32 1e-07, %v1360_v60  ;;  %v1371_v5 = vand.u32 2147483647, %v3742_v56  ;;  %v759_v0 = vadd.f32 1.0, %v695_v9  ;;  %v2604_v3 = vpop.eup %2603  ;;  %v1829_v33 = vsub.f32 1.0, %v1828_v23  ;;  %vm1819_vm15 = vmor %vm1817_vm8, %vm1818_vm12 }
 0x18c   :  { %v1815_v8 = vmul.f32 %v2600_v10, %v1814_v14  ;;  %v536_v22 = vunpack.c.2.s8 %v3576_v35  ;;  %v537_v19 = vunpack.c.2.s8 %v3617_v15  ;;  %vm3761_vm13 = vcmp.eq.f32.partialorder %v1836_v13, 8.507059e+37 }
 0x18d   :  { %v2133_v20 = vmul.f32 0.9999998, %v2069_v47  ;;  %v1839_v27 = vor.u32 1.1754944e-38, %v1838_v61  ;;  %v3765_v29 = vadd.f32 1.0, %v2604_v3  ;;  %v1830_v34 = vmul.f32 %v2602_v53, %v1829_v33 }
 0x18e   :  { %v2606_v32 = vpop.eup %2605  ;;  %v1816_v24 = vadd.f32 %v2600_v10, %v1815_v8  ;;  %vm1833_vm14 = vweird.f32 %v2602_v53  ;;  %v823_v26 = vmul.f32 %v759_v0, %v479_v18  ;;  %vm1367_vm0 = vweird.f32 %v3742_v56 }
 0x18f   :  { %v2608_v37 = vpop.eup %2607  ;;  %2197 = vst [vmem:[#allocation2 + $0x88] sm:$0xff] %v2133_v20  ;;  %v1373_v39 = vand.u32 2147483648, %v3742_v56  ;;  %2609 = vrcp.f32 %v3765_v29  ;;  %v600_v17 = vcvt.s32.f32 %v536_v22  ;;  %v1831_v28 = vadd.f32 %v2602_v53, %v1830_v34  ;;  %vm1834_vm2 = vmor %vm1832_vm11, %vm1833_vm14 }
 0x190   :  { %v1820_v42 = vsel %vm1819_vm15, %v2600_v10, %v1816_v24  ;;  %v1363_v43 = vmul.f32 %v2608_v37, %v3742_v56  ;;  %vm3774_vm1 = vcmp.eq.f32.partialorder %v1371_v5, 8.507059e+37  ;;  %v601_v25 = vcvt.s32.f32 %v537_v19  ;;  %v369_v24 = vpop.f32.mrf.mxu2 }
 0x191   :  { %v1825_v41 = vsel %vm3747_vm10, %v1824_v6, %v1820_v42  ;;  %v1386_v44 = vand.u32 2147483647, %v3765_v29  ;;  %v1388_v48 = vand.u32 2147483648, %v3765_v29  ;;  %v3785_v49 = vadd.f32 1.0, %v2606_v32 }
 0x192   :  { %v2100_v38 = vadd.f32 1e-07, %v1825_v41  ;;  %v1835_v31 = vsel %vm1834_vm2, %v2602_v53, %v1831_v28  ;;  %v1364_v45 = vsub.f32 1.0, %v1363_v43  ;;  %v2409_v52 = vmul.f32 -1.442695, %v823_v26  ;;  %v482_v28 = vpop.f32.mrf.mxu3 }
 0x193   :  { %v1840_v4 = vsel %vm3761_vm13, %v1839_v27, %v1835_v31  ;;  %v1374_v58 = vor.u32 1.1754944e-38, %v1373_v39  ;;  %vm1382_vm3 = vweird.f32 %v3765_v29  ;;  %2611 = vrcp.f32 %v3785_v49 }
 0x194   :  { %v2164_v40 = vmul.f32 0.9999998, %v2100_v38  ;;  %v2101_v30 = vadd.f32 1e-07, %v1840_v4  ;;  %v1365_v59 = vmul.f32 %v2608_v37, %v1364_v45  ;;  %vm1368_vm4 = vweird.f32 %v2608_v37  ;;  %v324_v4 = vpop.f32.mrf.mxu0 }
 0x195   :  { %v2610_v46 = vpop.eup %2609  ;;  %v1389_v63 = vor.u32 1.1754944e-38, %v1388_v48  ;;  %2613 = vpow2.f32 %v2409_v52  ;;  %v664_v36 = vmul.f32 0.5, %v600_v17  ;;  %v665_v1 = vmul.f32 0.5, %v601_v25  ;;  %vm1369_vm6 = vmor %vm1367_vm0, %vm1368_vm4 }
 0x196   :  { %2228 = vst [vmem:[#allocation2 + $0x180] sm:$0xff] %v2164_v40  ;;  %v2165_v50 = vmul.f32 0.9999998, %v2101_v30  ;;  %v1366_v7 = vadd.f32 %v2608_v37, %v1365_v59  ;;  %v1378_v51 = vmul.f32 %v2610_v46, %v3765_v29  ;;  %vm3792_vm5 = vcmp.eq.f32.partialorder %v1386_v44, 8.507059e+37 }
 0x197   :  { %v1851_v10 = vand.u32 2147483647, %v3785_v49  ;;  %v1853_v11 = vand.u32 2147483648, %v3785_v49  ;;  %v728_v12 = vadd.f32 1.0, %v664_v36  ;;  %v729_v6 = vadd.f32 1.0, %v665_v1 }
 0x198   :  { %v568_v53 = vunpack.c.2.s8 %v3641_v54  ;;  %2229 = vst [vmem:[#allocation2 + $0x188] sm:$0xff] %v2165_v50  ;;  %v1370_v57 = vsel %vm1369_vm6, %v2608_v37, %v1366_v7  ;;  %v1379_v13 = vsub.f32 1.0, %v1378_v51  ;;  %v569_v61 = vunpack.c.2.s8 %v3648_v62 }
 0x199   :  { %v538_v60 = vunpack.c.3.s8 %v3576_v35  ;;  %v2612_v14 = vpop.eup %2611  ;;  %v1375_v23 = vsel %vm3774_vm1, %v1374_v58, %v1370_v57  ;;  %v792_v47 = vmul.f32 %v728_v12, %v321_v55  ;;  %v793_v56 = vmul.f32 %v729_v6, %v434_v16  ;;  %v437_v12 = vpop.f32.mrf.mxu1 }
 0x19a   :  { %v632_v5 = vcvt.s32.f32 %v568_v53  ;;  %v2070_v18 = vadd.f32 1e-07, %v1375_v23  ;;  %v1380_v0 = vmul.f32 %v2610_v46, %v1379_v13  ;;  %vm1383_vm7 = vweird.f32 %v2610_v46 }
 0x19b   :  { %v1843_v3 = vmul.f32 %v2612_v14, %v3785_v49  ;;  %v2614_v8 = vpop.eup %2613  ;;  %v2378_v33 = vmul.f32 -1.442695, %v792_v47  ;;  %v2379_v22 = vmul.f32 -1.442695, %v793_v56  ;;  %v633_v20 = vcvt.s32.f32 %v569_v61  ;;  %vm1384_vm8 = vmor %vm1382_vm3, %vm1383_vm7 }
 0x19c   :  { %v696_v19 = vmul.f32 0.5, %v632_v5  ;;  %v2134_v21 = vmul.f32 0.9999998, %v2070_v18  ;;  %v1381_v27 = vadd.f32 %v2610_v46, %v1380_v0  ;;  %v3806_v32 = vadd.f32 1.0, %v2614_v8 }
 0x19d   :  { %v1844_v35 = vsub.f32 1.0, %v1843_v3  ;;  %2615 = vpow2.f32 %v2378_v33  ;;  %v697_v26 = vmul.f32 0.5, %v633_v20  ;;  %v602_v37 = vcvt.s32.f32 %v538_v60 }
 0x19e   :  { %v760_v34 = vadd.f32 1.0, %v696_v19  ;;  %2198 = vst [vmem:[#allocation2 + $0x90] sm:$0xff] %v2134_v21  ;;  %v1385_v39 = vsel %vm1384_vm8, %v2610_v46, %v1381_v27  ;;  %vm1848_vm9 = vweird.f32 %v2612_v14  ;;  %2617 = vrcp.f32 %v3806_v32  ;;  %v3849_v27 = vld [vmem:[%s4151_s0 + $0x30] sm:$0xff] }
 0x19f   :  { %v1845_v17 = vmul.f32 %v2612_v14, %v1844_v35  ;;  %v1390_v42 = vsel %vm3792_vm5, %v1389_v63, %v1385_v39  ;;  %vm1847_vm10 = vweird.f32 %v3785_v49  ;;  %2619 = vpow2.f32 %v2379_v22 }
 0x1a0   :  { %v2071_v29 = vadd.f32 1e-07, %v1390_v42  ;;  %v824_v2 = vmul.f32 %v760_v34, %v369_v24  ;;  %v761_v25 = vadd.f32 1.0, %v697_v26  ;;  %vm1849_vm11 = vmor %vm1847_vm10, %vm1848_vm9  ;;  %vm1852_vm12 = vcmp.eq.f32.partialorder %v1851_v10, 8.507059e+37 }
 0x1a1   :  { %v1846_v43 = vadd.f32 %v2612_v14, %v1845_v17  ;;  %v1854_v41 = vor.u32 1.1754944e-38, %v1853_v11  ;;  %v666_v44 = vmul.f32 0.5, %v602_v37  ;;  %v539_v48 = vunpack.c.3.s8 %v3617_v15 }
 0x1a2   :  { %v2135_v38 = vmul.f32 0.9999998, %v2071_v29  ;;  %v2410_v45 = vmul.f32 -1.442695, %v824_v2  ;;  %v825_v52 = vmul.f32 %v761_v25, %v482_v28  ;;  %v1866_v9 = vand.u32 2147483647, %v3806_v32 }
 0x1a3   :  { %v1850_v31 = vsel %vm1849_vm11, %v2612_v14, %v1846_v43  ;;  %v2616_v58 = vpop.eup %2615  ;;  %v730_v49 = vadd.f32 1.0, %v666_v44  ;;  %v603_v30 = vcvt.s32.f32 %v539_v48  ;;  %v570_v10 = vunpack.c.3.s8 %v3641_v54 }
 0x1a4   :  { %v1855_v40 = vsel %vm1852_vm12, %v1854_v41, %v1850_v31  ;;  %v2618_v59 = vpop.eup %2617  ;;  %2199 = vst [vmem:[#allocation2 + $0x98] sm:$0xff] %v2135_v38  ;;  %v3815_v63 = vadd.f32 1.0, %v2616_v58  ;;  %2621 = vpow2.f32 %v2410_v45  ;;  %v2411_v36 = vmul.f32 -1.442695, %v825_v52 }
 0x1a5   :  { %v2102_v46 = vadd.f32 1e-07, %v1855_v40  ;;  %v2620_v1 = vpop.eup %2619  ;;  %v1858_v50 = vmul.f32 %v2618_v59, %v3806_v32  ;;  %v794_v15 = vmul.f32 %v730_v49, %v324_v4  ;;  %v667_v7 = vmul.f32 0.5, %v603_v30 }
 0x1a6   :  { %2623 = vrcp.f32 %v3815_v63  ;;  %v1868_v16 = vand.u32 2147483648, %v3806_v32  ;;  %v3822_v11 = vadd.f32 1.0, %v2620_v1  ;;  %vm1862_vm13 = vweird.f32 %v3806_v32 }
 0x1a7   :  { %v2166_v51 = vmul.f32 0.9999998, %v2102_v46  ;;  %v1859_v55 = vsub.f32 1.0, %v1858_v50  ;;  %2625 = vpow2.f32 %v2411_v36  ;;  %v1403_v6 = vand.u32 2147483648, %v3815_v63 }
 0x1a8   :  { %v2380_v53 = vmul.f32 -1.442695, %v794_v15  ;;  %v731_v57 = vadd.f32 1.0, %v667_v7  ;;  %vm1863_vm14 = vweird.f32 %v2618_v59  ;;  %v1401_v61 = vand.u32 2147483647, %v3815_v63 }
 0x1a9   :  { %2230 = vst [vmem:[#allocation2 + $0x190] sm:$0xff] %v2166_v51  ;;  %v1860_v13 = vmul.f32 %v2618_v59, %v1859_v55  ;;  %2627 = vrcp.f32 %v3822_v11  ;;  %vm3828_vm15 = vcmp.eq.f32.partialorder %v1866_v9, 8.507059e+37  ;;  %v634_v23 = vcvt.s32.f32 %v570_v10  ;;  %vm1864_vm1 = vmor %vm1862_vm13, %vm1863_vm14 }
 0x1aa   :  { %v2622_v54 = vpop.eup %2621  ;;  %2629 = vpow2.f32 %v2380_v53  ;;  %v795_v14 = vmul.f32 %v731_v57, %v437_v12  ;;  %v1869_v56 = vor.u32 1.1754944e-38, %v1868_v16  ;;  %vm1397_vm0 = vweird.f32 %v3815_v63 }
 0x1ab   :  { %v1861_v47 = vadd.f32 %v2618_v59, %v1860_v13  ;;  %v3833_v5 = vadd.f32 1.0, %v2622_v54  ;;  %v1404_v0 = vor.u32 1.1754944e-38, %v1403_v6  ;;  %vm1412_vm2 = vweird.f32 %v3822_v11 }
 0x1ac   :  { %v2624_v18 = vpop.eup %2623  ;;  %v1416_v3 = vand.u32 2147483647, %v3822_v11  ;;  %v2381_v8 = vmul.f32 -1.442695, %v795_v14  ;;  %vm3840_vm3 = vcmp.eq.f32.partialorder %v1401_v61, 8.507059e+37  ;;  %v1418_v21 = vand.u32 2147483648, %v3822_v11 }
 0x1ad   :  { %v2626_v33 = vpop.eup %2625  ;;  %v1865_v22 = vsel %vm1864_vm1, %v2618_v59, %v1861_v47  ;;  %v1393_v19 = vmul.f32 %v2624_v18, %v3815_v63  ;;  %2631 = vrcp.f32 %v3833_v5  ;;  %v1883_v32 = vand.u32 2147483648, %v3833_v5  ;;  %v372_v59 = vpop.f32.mrf.mxu2 }
 0x1ae   :  { %v1870_v35 = vsel %vm3828_vm15, %v1869_v56, %v1865_v22  ;;  %v698_v24 = vmul.f32 0.5, %v634_v23  ;;  %v571_v34 = vunpack.c.3.s8 %v3648_v62  ;;  %v3855_v17 = vadd.f32 1.0, %v2626_v33 }
 0x1af   :  { %v2628_v26 = vpop.eup %2627  ;;  %v2103_v37 = vadd.f32 1e-07, %v1870_v35  ;;  %v1394_v39 = vsub.f32 1.0, %v1393_v19  ;;  %2633 = vpow2.f32 %v2381_v8  ;;  %vm3858_vm4 = vcmp.eq.f32.partialorder %v1416_v3, 8.507059e+37  ;;  %v3908_v19 = vld [vmem:[%s4151_s0 + $0x38] sm:$0xff] }
 0x1b0   :  { %v2630_v42 = vpop.eup %2629  ;;  %v1408_v28 = vmul.f32 %v2628_v26, %v3822_v11  ;;  %v1881_v43 = vand.u32 2147483647, %v3833_v5  ;;  %v540_v2 = vunpack.c.0.s8 %v3849_v27  ;;  %vm1398_vm5 = vweird.f32 %v2624_v18 }
 0x1b1   :  { %v2167_v25 = vmul.f32 0.9999998, %v2103_v37  ;;  %v1395_v41 = vmul.f32 %v2624_v18, %v1394_v39  ;;  %2635 = vrcp.f32 %v3855_v17  ;;  %v1419_v44 = vor.u32 1.1754944e-38, %v1418_v21  ;;  %vm1399_vm8 = vmor %vm1397_vm0, %vm1398_vm5 }
 0x1b2   :  { %v1409_v62 = vsub.f32 1.0, %v1408_v28  ;;  %vm1877_vm6 = vweird.f32 %v3833_v5  ;;  %v3866_v48 = vadd.f32 1.0, %v2630_v42  ;;  %vm1413_vm7 = vweird.f32 %v2628_v26 }
 0x1b3   :  { %v2632_v38 = vpop.eup %2631  ;;  %2231 = vst [vmem:[#allocation2 + $0x198] sm:$0xff] %v2167_v25  ;;  %v1396_v31 = vadd.f32 %v2624_v18, %v1395_v41  ;;  %v1884_v45 = vor.u32 1.1754944e-38, %v1883_v32  ;;  %v762_v52 = vadd.f32 1.0, %v698_v24  ;;  %vm3871_vm9 = vcmp.eq.f32.partialorder %v1881_v43, 8.507059e+37  ;;  %vm1414_vm12 = vmor %vm1412_vm2, %vm1413_vm7  ;;  %v485_v41 = vpop.f32.mrf.mxu3 }
 0x1b4   :  { %v1410_v4 = vmul.f32 %v2628_v26, %v1409_v62  ;;  %v1873_v58 = vmul.f32 %v2632_v38, %v3833_v5  ;;  %v1896_v49 = vand.u32 2147483647, %v3855_v17  ;;  %v1898_v30 = vand.u32 2147483648, %v3855_v17  ;;  %v3913_v5 = vld [vmem:[%s4151_s0 + $0x70] sm:$0xff] }
 0x1b5   :  { %v2634_v46 = vpop.eup %2633  ;;  %v1400_v36 = vsel %vm1399_vm8, %v2624_v18, %v1396_v31  ;;  %2637 = vrcp.f32 %v3866_v48  ;;  %v635_v1 = vcvt.s32.f32 %v571_v34  ;;  %v604_v50 = vcvt.s32.f32 %v540_v2 }
 0x1b6   :  { %v1405_v63 = vsel %vm3840_vm3, %v1404_v0, %v1400_v36  ;;  %v1411_v15 = vadd.f32 %v2628_v26, %v1410_v4  ;;  %v1874_v7 = vsub.f32 1.0, %v1873_v58  ;;  %vm1878_vm10 = vweird.f32 %v2632_v38 }
 0x1b7   :  { %vm1892_vm11 = vweird.f32 %v3855_v17  ;;  %v2636_v51 = vpop.eup %2635  ;;  %v2072_v9 = vadd.f32 1e-07, %v1405_v63  ;;  %v1433_v10 = vand.u32 2147483648, %v3866_v48  ;;  %v3885_v55 = vadd.f32 1.0, %v2634_v46  ;;  %vm1879_vm14 = vmor %vm1877_vm6, %vm1878_vm10 }
 0x1b8   :  { %v826_v16 = vmul.f32 %v762_v52, %v372_v59  ;;  %v1415_v12 = vsel %vm1414_vm12, %v2628_v26, %v1411_v15  ;;  %v1875_v6 = vmul.f32 %v2632_v38, %v1874_v7  ;;  %v1888_v53 = vmul.f32 %v2636_v51, %v3855_v17  ;;  %v3923_v26 = vld [vmem:[%s4151_s0 + $0x78] sm:$0xff]  ;;  %v327_v17 = vpop.f32.mrf.mxu0  ;;  %s2739_s0 = smov [#allocation2]  }
 0x1b9   :  { %v1431_v57 = vand.u32 2147483647, %v3866_v48  ;;  %v2136_v13 = vmul.f32 0.9999998, %v2072_v9  ;;  %v1420_v61 = vsel %vm3858_vm4, %v1419_v44, %v1415_v12  ;;  %vm3891_vm13 = vcmp.eq.f32.partialorder %v1896_v49, 8.507059e+37  ;;  %v440_v9 = vpop.f32.mrf.mxu1  ;;  %s2248_s5 = sshll.u32 %s2739_s0, 4  ;;  %s2249_s5 = int_to_ptr.vmem [resolvable:$true] %s2248_s5 }
 0x1ba   :  { %v1899_v11 = vor.u32 1.1754944e-38, %v1898_v30  ;;  %v2073_v60 = vadd.f32 1e-07, %v1420_v61  ;;  %v1876_v14 = vadd.f32 %v2632_v38, %v1875_v6  ;;  %v1889_v23 = vsub.f32 1.0, %v1888_v53 }
 0x1bb   :  { %2639 = vrcp.f32 %v3885_v55  ;;  %v2638_v47 = vpop.eup %2637  ;;  %2200 = vst [vmem:[#allocation2 + $0xa0] sm:$0xff] %v2136_v13  ;;  %vm1893_vm15 = vweird.f32 %v2636_v51  ;;  %vm1427_vm0 = vweird.f32 %v3866_v48  ;;  %v1434_v56 = vor.u32 1.1754944e-38, %v1433_v10 }
 0x1bc   :  { %v2412_v18 = vmul.f32 -1.442695, %v826_v16  ;;  %v2137_v0 = vmul.f32 0.9999998, %v2073_v60  ;;  %v1880_v3 = vsel %vm1879_vm14, %v2632_v38, %v1876_v14  ;;  %v1890_v8 = vmul.f32 %v2636_v51, %v1889_v23  ;;  %vm1894_vm3 = vmor %vm1892_vm11, %vm1893_vm15  ;;  %v375_v23 = vpop.f32.mrf.mxu2 }
 0x1bd   :  { %v1423_v33 = vmul.f32 %v2638_v47, %v3866_v48  ;;  %vm3901_vm1 = vcmp.eq.f32.partialorder %v1431_v57, 8.507059e+37  ;;  %v1885_v20 = vsel %vm3871_vm9, %v1884_v45, %v1880_v3  ;;  %vm1442_vm2 = vweird.f32 %v3885_v55 }
 0x1be   :  { %v1446_v21 = vand.u32 2147483647, %v3885_v55  ;;  %v1448_v35 = vand.u32 2147483648, %v3885_v55  ;;  %2201 = vst [vmem:[#allocation2 + $0xa8] sm:$0xff] %v2137_v0  ;;  %v2104_v32 = vadd.f32 1e-07, %v1885_v20  ;;  %v1891_v24 = vadd.f32 %v2636_v51, %v1890_v8  ;;  %v488_v0 = vpop.f32.mrf.mxu3 }
 0x1bf   :  { %v1424_v34 = vsub.f32 1.0, %v1423_v33  ;;  %2641 = vpow2.f32 %v2412_v18  ;;  %v699_v37 = vmul.f32 0.5, %v635_v1  ;;  %v668_v39 = vmul.f32 0.5, %v604_v50 }
 0x1c0   :  { %v541_v42 = vunpack.c.0.s8 %v3908_v19  ;;  %v572_v28 = vunpack.c.0.s8 %v3913_v5  ;;  %v2168_v43 = vmul.f32 0.9999998, %v2104_v32  ;;  %v1895_v2 = vsel %vm1894_vm3, %v2636_v51, %v1891_v24 }
 0x1c1   :  { %v2640_v29 = vpop.eup %2639  ;;  %v1425_v25 = vmul.f32 %v2638_v47, %v1424_v34  ;;  %vm1428_vm4 = vweird.f32 %v2638_v47  ;;  %v1900_v62 = vsel %vm3891_vm13, %v1899_v11, %v1895_v2  ;;  %v763_v38 = vadd.f32 1.0, %v699_v37 }
 0x1c2   :  { %v1438_v44 = vmul.f32 %v2640_v29, %v3885_v55  ;;  %v573_v31 = vunpack.c.0.s8 %v3923_v26  ;;  %2232 = vst [vmem:[#allocation2 + $0x1a0] sm:$0xff] %v2168_v43  ;;  %v2105_v45 = vadd.f32 1e-07, %v1900_v62  ;;  %v732_v4 = vadd.f32 1.0, %v668_v39  ;;  %vm1429_vm5 = vmor %vm1427_vm0, %vm1428_vm4 }
 0x1c3   :  { %v1426_v52 = vadd.f32 %v2638_v47, %v1425_v25  ;;  %v605_v58 = vcvt.s32.f32 %v541_v42  ;;  %vm1443_vm6 = vweird.f32 %v2640_v29  ;;  %v827_v49 = vmul.f32 %v763_v38, %v485_v41 }
 0x1c4   :  { %v1439_v40 = vsub.f32 1.0, %v1438_v44  ;;  %v636_v30 = vcvt.s32.f32 %v572_v28  ;;  %v2169_v46 = vmul.f32 0.9999998, %v2105_v45  ;;  %v796_v1 = vmul.f32 %v732_v4, %v327_v17  ;;  %vm1444_vm7 = vmor %vm1442_vm2, %vm1443_vm6  ;;  %v330_v17 = vpop.f32.mrf.mxu0 }
 0x1c5   :  { %v2642_v59 = vpop.eup %2641  ;;  %v1430_v36 = vsel %vm1429_vm5, %v2638_v47, %v1426_v52  ;;  %v669_v50 = vmul.f32 0.5, %v605_v58  ;;  %v2413_v51 = vmul.f32 -1.442695, %v827_v49  ;;  %v637_v12 = vcvt.s32.f32 %v573_v31 }
 0x1c6   :  { %v1435_v63 = vsel %vm3901_vm1, %v1434_v56, %v1430_v36  ;;  %v1440_v15 = vmul.f32 %v2640_v29, %v1439_v40  ;;  %v3938_v7 = vadd.f32 1.0, %v2642_v59  ;;  %2233 = vst [vmem:[#allocation2 + $0x1a8] sm:$0xff] %v2169_v46  ;;  %v2382_v10 = vmul.f32 -1.442695, %v796_v1 }
 0x1c7   :  { %v2074_v48 = vadd.f32 1e-07, %v1435_v63  ;;  %v733_v16 = vadd.f32 1.0, %v669_v50  ;;  %v542_v53 = vunpack.c.1.s8 %v3849_v27  ;;  %v1449_v13 = vor.u32 1.1754944e-38, %v1448_v35 }
 0x1c8   :  { %v1441_v6 = vadd.f32 %v2640_v29, %v1440_v15  ;;  %2643 = vrcp.f32 %v3938_v7  ;;  %vm1447_vm8 = vcmp.eq.f32.partialorder %v1446_v21, 8.507059e+37  ;;  %v700_v11 = vmul.f32 0.5, %v636_v30 }
 0x1c9   :  { %v2138_v57 = vmul.f32 0.9999998, %v2074_v48  ;;  %2645 = vpow2.f32 %v2413_v51  ;;  %v797_v61 = vmul.f32 %v733_v16, %v440_v9  ;;  %v701_v47 = vmul.f32 0.5, %v637_v12  ;;  %v443_v51 = vpop.f32.mrf.mxu1 }
 0x1ca   :  { %v1445_v54 = vsel %vm1444_vm7, %v2640_v29, %v1441_v6  ;;  %2647 = vpow2.f32 %v2382_v10  ;;  %v764_v18 = vadd.f32 1.0, %v700_v11  ;;  %v606_v3 = vcvt.s32.f32 %v542_v53 }
 0x1cb   :  { %2202 = vst [vmem:[#allocation2 + $0xb0] sm:$0xff] %v2138_v57  ;;  %v1450_v60 = vsel %vm1447_vm8, %v1449_v13, %v1445_v54  ;;  %v2383_v14 = vmul.f32 -1.442695, %v797_v61  ;;  %v543_v8 = vunpack.c.1.s8 %v3908_v19  ;;  %v1911_v55 = vand.u32 2147483647, %v3938_v7  ;;  %v378_v13 = vpop.f32.mrf.mxu2 }
 0x1cc   :  { %v2075_v56 = vadd.f32 1e-07, %v1450_v60  ;;  %v765_v33 = vadd.f32 1.0, %v701_v47  ;;  %v574_v22 = vunpack.c.1.s8 %v3913_v5  ;;  %v1913_v35 = vand.u32 2147483648, %v3938_v7 }
 0x1cd   :  { %2649 = vpow2.f32 %v2383_v14  ;;  %v828_v32 = vmul.f32 %v764_v18, %v375_v23  ;;  %v670_v24 = vmul.f32 0.5, %v606_v3  ;;  %v607_v29 = vcvt.s32.f32 %v543_v8 }
 0x1ce   :  { %v2644_v20 = vpop.eup %2643  ;;  %v2139_v21 = vmul.f32 0.9999998, %v2075_v56  ;;  %v829_v39 = vmul.f32 %v765_v33, %v488_v0  ;;  %v638_v43 = vcvt.s32.f32 %v574_v22  ;;  %vm1907_vm9 = vweird.f32 %v3938_v7 }
 0x1cf   :  { %v2646_v34 = vpop.eup %2645  ;;  %v1903_v37 = vmul.f32 %v2644_v20, %v3938_v7  ;;  %v2414_v41 = vmul.f32 -1.442695, %v828_v32  ;;  %v734_v62 = vadd.f32 1.0, %v670_v24  ;;  %vm3955_vm10 = vcmp.eq.f32.partialorder %v1911_v55, 8.507059e+37 }
 0x1d0   :  { %v2648_v42 = vpop.eup %2647  ;;  %2203 = vst [vmem:[#allocation2 + $0xb8] sm:$0xff] %v2139_v21  ;;  %v3950_v28 = vadd.f32 1.0, %v2646_v34  ;;  %v1914_v38 = vor.u32 1.1754944e-38, %v1913_v35  ;;  %vm1908_vm11 = vweird.f32 %v2644_v20  ;;  %v2415_v52 = vmul.f32 -1.442695, %v829_v39 }
 0x1d1   :  { %v1904_v2 = vsub.f32 1.0, %v1903_v37  ;;  %v3952_v25 = vadd.f32 1.0, %v2648_v42  ;;  %v671_v40 = vmul.f32 0.5, %v607_v29  ;;  %v702_v49 = vmul.f32 0.5, %v638_v43  ;;  %vm1909_vm12 = vmor %vm1907_vm9, %vm1908_vm11 }
 0x1d2   :  { %2651 = vrcp.f32 %v3950_v28  ;;  %v1926_v4 = vand.u32 2147483647, %v3950_v28  ;;  %v1928_v59 = vand.u32 2147483648, %v3950_v28  ;;  %v798_v46 = vmul.f32 %v734_v62, %v330_v17 }
 0x1d3   :  { %v2650_v31 = vpop.eup %2649  ;;  %v1905_v45 = vmul.f32 %v2644_v20, %v1904_v2  ;;  %2653 = vrcp.f32 %v3952_v25  ;;  %v1461_v36 = vand.u32 2147483647, %v3952_v25  ;;  %v1463_v1 = vand.u32 2147483648, %v3952_v25 }
 0x1d4   :  { %v3962_v58 = vadd.f32 1.0, %v2650_v31  ;;  %2655 = vpow2.f32 %v2414_v41  ;;  %v575_v50 = vunpack.c.1.s8 %v3923_v26  ;;  %vm1922_vm13 = vweird.f32 %v3950_v28 }
 0x1d5   :  { %v1906_v30 = vadd.f32 %v2644_v20, %v1905_v45  ;;  %v2384_v15 = vmul.f32 -1.442695, %v798_v46  ;;  %vm1457_vm14 = vweird.f32 %v3952_v25  ;;  %v735_v7 = vadd.f32 1.0, %v671_v40 }
 0x1d6   :  { %2657 = vrcp.f32 %v3962_v58  ;;  %v766_v10 = vadd.f32 1.0, %v702_v49  ;;  %vm3976_vm15 = vcmp.eq.f32.partialorder %v1926_v4, 8.507059e+37  ;;  %v1929_v57 = vor.u32 1.1754944e-38, %v1928_v59 }
 0x1d7   :  { %v1910_v63 = vsel %vm1909_vm12, %v2644_v20, %v1906_v30  ;;  %2659 = vpow2.f32 %v2415_v52  ;;  %vm3981_vm0 = vcmp.eq.f32.partialorder %v1461_v36, 8.507059e+37  ;;  %v1464_v11 = vor.u32 1.1754944e-38, %v1463_v1 }
 0x1d8   :  { %v2652_v9 = vpop.eup %2651  ;;  %v1915_v48 = vsel %vm3955_vm10, %v1914_v38, %v1910_v63  ;;  %v1476_v60 = vand.u32 2147483647, %v3962_v58  ;;  %v799_v14 = vmul.f32 %v735_v7, %v443_v51  ;;  %vm1472_vm1 = vweird.f32 %v3962_v58 }
 0x1d9   :  { %v2654_v16 = vpop.eup %2653  ;;  %v2106_v12 = vadd.f32 1e-07, %v1915_v48  ;;  %v1918_v6 = vmul.f32 %v2652_v9, %v3950_v28  ;;  %2661 = vpow2.f32 %v2384_v15  ;;  %v830_v55 = vmul.f32 %v766_v10, %v378_v13 }
 0x1da   :  { %v1453_v61 = vmul.f32 %v2654_v16, %v3952_v25  ;;  %v2656_v23 = vpop.eup %2655  ;;  %v2385_v8 = vmul.f32 -1.442695, %v799_v14  ;;  %vm1923_vm2 = vweird.f32 %v2652_v9  ;;  %v1478_v21 = vand.u32 2147483648, %v3962_v58 }
 0x1db   :  { %v2170_v47 = vmul.f32 0.9999998, %v2106_v12  ;;  %v1919_v56 = vsub.f32 1.0, %v1918_v6  ;;  %v3987_v3 = vadd.f32 1.0, %v2656_v23  ;;  %vm1458_vm3 = vweird.f32 %v2654_v16  ;;  %vm1924_vm5 = vmor %vm1922_vm13, %vm1923_vm2 }
 0x1dc   :  { %v2658_v18 = vpop.eup %2657  ;;  %v1454_v0 = vsub.f32 1.0, %v1453_v61  ;;  %vm3991_vm4 = vcmp.eq.f32.partialorder %v1476_v60, 8.507059e+37  ;;  %v639_v39 = vcvt.s32.f32 %v575_v50  ;;  %v2416_v29 = vmul.f32 -1.442695, %v830_v55  ;;  %vm1459_vm7 = vmor %vm1457_vm14, %vm1458_vm3  ;;  %v491_v61 = vpop.f32.mrf.mxu3 }
 0x1dd   :  { %v2660_v33 = vpop.eup %2659  ;;  %2234 = vst [vmem:[#allocation2 + $0x1b0] sm:$0xff] %v2170_v47  ;;  %v1920_v22 = vmul.f32 %v2652_v9, %v1919_v56  ;;  %v1468_v20 = vmul.f32 %v2658_v18, %v3962_v58  ;;  %2663 = vrcp.f32 %v3987_v3  ;;  %vm1473_vm6 = vweird.f32 %v2658_v18 }
 0x1de   :  { %v1455_v35 = vmul.f32 %v2654_v16, %v1454_v0  ;;  %v3996_v37 = vadd.f32 1.0, %v2660_v33  ;;  %2665 = vpow2.f32 %v2385_v8  ;;  %v1941_v62 = vand.u32 2147483647, %v3987_v3  ;;  %vm1474_vm9 = vmor %vm1472_vm1, %vm1473_vm6 }
 0x1df   :  { %v1921_v24 = vadd.f32 %v2652_v9, %v1920_v22  ;;  %v1469_v34 = vsub.f32 1.0, %v1468_v20  ;;  %v2662_v43 = vpop.eup %2661  ;;  %v1479_v28 = vor.u32 1.1754944e-38, %v1478_v21  ;;  %v544_v17 = vunpack.c.2.s8 %v3849_v27 }
 0x1e0   :  { %v1456_v42 = vadd.f32 %v2654_v16, %v1455_v35  ;;  %2667 = vrcp.f32 %v3996_v37  ;;  %vm1937_vm8 = vweird.f32 %v3987_v3  ;;  %v1943_v25 = vand.u32 2147483648, %v3987_v3 }
 0x1e1   :  { %v1925_v2 = vsel %vm1924_vm5, %v2652_v9, %v1921_v24  ;;  %v1470_v41 = vmul.f32 %v2658_v18, %v1469_v34  ;;  %v4014_v49 = vadd.f32 1.0, %v2662_v43  ;;  %2669 = vpow2.f32 %v2416_v29 }
 0x1e2   :  { %v1930_v44 = vsel %vm3976_vm15, %v1929_v57, %v1925_v2  ;;  %v1460_v38 = vsel %vm1459_vm7, %v2654_v16, %v1456_v42  ;;  %v703_v30 = vmul.f32 0.5, %v639_v39  ;;  %vm4017_vm10 = vcmp.eq.f32.partialorder %v1941_v62, 8.507059e+37 }
 0x1e3   :  { %v2107_v31 = vadd.f32 1e-07, %v1930_v44  ;;  %v1465_v45 = vsel %vm3981_vm0, %v1464_v11, %v1460_v38  ;;  %v1471_v52 = vadd.f32 %v2658_v18, %v1470_v41  ;;  %v2664_v4 = vpop.eup %2663  ;;  %v1956_v50 = vand.u32 2147483647, %v3996_v37 }
 0x1e4   :  { %v2076_v40 = vadd.f32 1e-07, %v1465_v45  ;;  %v1933_v36 = vmul.f32 %v2664_v4, %v3987_v3  ;;  %v2666_v63 = vpop.eup %2665  ;;  %v1958_v51 = vand.u32 2147483648, %v3996_v37  ;;  %2671 = vrcp.f32 %v4014_v49 }
 0x1e5   :  { %v2171_v59 = vmul.f32 0.9999998, %v2107_v31  ;;  %v1475_v46 = vsel %vm1474_vm9, %v2658_v18, %v1471_v52  ;;  %v1944_v10 = vor.u32 1.1754944e-38, %v1943_v25  ;;  %vm1952_vm11 = vweird.f32 %v3996_v37 }
 0x1e6   :  { %v2140_v15 = vmul.f32 0.9999998, %v2076_v40  ;;  %v1480_v58 = vsel %vm3991_vm4, %v1479_v28, %v1475_v46  ;;  %v2668_v9 = vpop.eup %2667  ;;  %v1934_v7 = vsub.f32 1.0, %v1933_v36  ;;  %vm1938_vm12 = vweird.f32 %v2664_v4  ;;  %v333_v40 = vpop.f32.mrf.mxu0 }
 0x1e7   :  { %2235 = vst [vmem:[#allocation2 + $0x1b8] sm:$0xff] %v2171_v59  ;;  %v2077_v48 = vadd.f32 1e-07, %v1480_v58  ;;  %v1948_v16 = vmul.f32 %v2668_v9, %v3996_v37  ;;  %v1491_v12 = vand.u32 2147483647, %v4014_v49  ;;  %v4029_v6 = vadd.f32 1.0, %v2666_v63  ;;  %v2670_v11 = vpop.eup %2669  ;;  %vm1939_vm0 = vmor %vm1937_vm8, %vm1938_vm12 }
 0x1e8   :  { %2204 = vst [vmem:[#allocation2 + $0xc0] sm:$0xff] %v2140_v15  ;;  %v1935_v57 = vmul.f32 %v2664_v4, %v1934_v7  ;;  %v1493_v13 = vand.u32 2147483648, %v4014_v49  ;;  %v767_v54 = vadd.f32 1.0, %v703_v30  ;;  %vm4032_vm13 = vcmp.eq.f32.partialorder %v1956_v50, 8.507059e+37 }
 0x1e9   :  { %v2141_v53 = vmul.f32 0.9999998, %v2077_v48  ;;  %v1949_v60 = vsub.f32 1.0, %v1948_v16  ;;  %v1959_v23 = vor.u32 1.1754944e-38, %v1958_v51  ;;  %2673 = vrcp.f32 %v4029_v6 }
 0x1ea   :  { %v1936_v47 = vadd.f32 %v2664_v4, %v1935_v57  ;;  %vm1953_vm14 = vweird.f32 %v2668_v9  ;;  %vm1487_vm15 = vweird.f32 %v4014_v49  ;;  %v4038_v56 = vadd.f32 1.0, %v2670_v11  ;;  %v2672_v18 = vpop.eup %2671 }
 0x1eb   :  { %2205 = vst [vmem:[#allocation2 + $0xc8] sm:$0xff] %v2141_v53  ;;  %v1950_v0 = vmul.f32 %v2668_v9, %v1949_v60  ;;  %v1508_v8 = vand.u32 2147483648, %v4029_v6  ;;  %v831_v55 = vmul.f32 %v767_v54, %v491_v61  ;;  %v608_v33 = vcvt.s32.f32 %v544_v17  ;;  %vm1954_vm3 = vmor %vm1952_vm11, %vm1953_vm14 }
 0x1ec   :  { %v1940_v22 = vsel %vm1939_vm0, %v2664_v4, %v1936_v47  ;;  %v1483_v20 = vmul.f32 %v2672_v18, %v4014_v49  ;;  %vm4045_vm1 = vcmp.eq.f32.partialorder %v1491_v12, 8.507059e+37  ;;  %v1494_v35 = vor.u32 1.1754944e-38, %v1493_v13  ;;  %v446_v12 = vpop.f32.mrf.mxu1 }
 0x1ed   :  { %v1506_v32 = vand.u32 2147483647, %v4029_v6  ;;  %v1945_v24 = vsel %vm4017_vm10, %v1944_v10, %v1940_v22  ;;  %v1951_v3 = vadd.f32 %v2668_v9, %v1950_v0  ;;  %vm1502_vm2 = vweird.f32 %v4029_v6 }
 0x1ee   :  { %2675 = vrcp.f32 %v4038_v56  ;;  %v2108_v34 = vadd.f32 1e-07, %v1945_v24  ;;  %v1484_v39 = vsub.f32 1.0, %v1483_v20  ;;  %vm1488_vm4 = vweird.f32 %v2672_v18  ;;  %v494_v20 = vpop.f32.mrf.mxu3 }
 0x1ef   :  { %v545_v42 = vunpack.c.2.s8 %v3908_v19  ;;  %v2674_v29 = vpop.eup %2673  ;;  %v1955_v43 = vsel %vm1954_vm3, %v2668_v9, %v1951_v3  ;;  %v1509_v2 = vor.u32 1.1754944e-38, %v1508_v8  ;;  %v2417_v41 = vmul.f32 -1.442695, %v831_v55  ;;  %vm1489_vm8 = vmor %vm1487_vm15, %vm1488_vm4  ;;  %v381_v55 = vpop.f32.mrf.mxu2 }
 0x1f0   :  { %v672_v62 = vmul.f32 0.5, %v608_v33  ;;  %v2172_v44 = vmul.f32 0.9999998, %v2108_v34  ;;  %v1960_v38 = vsel %vm4032_vm13, %v1959_v23, %v1955_v43  ;;  %v1485_v28 = vmul.f32 %v2672_v18, %v1484_v39 }
 0x1f1   :  { %v1498_v17 = vmul.f32 %v2674_v29, %v4029_v6  ;;  %vm4061_vm5 = vcmp.eq.f32.partialorder %v1506_v32, 8.507059e+37  ;;  %v2109_v37 = vadd.f32 1e-07, %v1960_v38  ;;  %vm1503_vm6 = vweird.f32 %v2674_v29 }
 0x1f2   :  { %v1971_v45 = vand.u32 2147483647, %v4038_v56  ;;  %v1973_v52 = vand.u32 2147483648, %v4038_v56  ;;  %2236 = vst [vmem:[#allocation2 + $0x1c0] sm:$0xff] %v2172_v44  ;;  %v1486_v25 = vadd.f32 %v2672_v18, %v1485_v28  ;;  %vm1967_vm7 = vweird.f32 %v4038_v56  ;;  %vm1504_vm10 = vmor %vm1502_vm2, %vm1503_vm6 }
 0x1f3   :  { %v1499_v4 = vsub.f32 1.0, %v1498_v17  ;;  %2677 = vpow2.f32 %v2417_v41  ;;  %v736_v30 = vadd.f32 1.0, %v672_v62  ;;  %v2173_v46 = vmul.f32 0.9999998, %v2109_v37 }
 0x1f4   :  { %v2676_v59 = vpop.eup %2675  ;;  %v609_v36 = vcvt.s32.f32 %v545_v42  ;;  %v576_v1 = vunpack.c.2.s8 %v3913_v5  ;;  %v577_v50 = vunpack.c.2.s8 %v3923_v26  ;;  %v1490_v63 = vsel %vm1489_vm8, %v2672_v18, %v1486_v25 }
 0x1f5   :  { %v1500_v15 = vmul.f32 %v2674_v29, %v1499_v4  ;;  %v1963_v58 = vmul.f32 %v2676_v59, %v4038_v56  ;;  %vm1968_vm9 = vweird.f32 %v2676_v59  ;;  %2237 = vst [vmem:[#allocation2 + $0x1c8] sm:$0xff] %v2173_v46  ;;  %v1495_v51 = vsel %vm4045_vm1, %v1494_v35, %v1490_v63 }
 0x1f6   :  { %v800_v9 = vmul.f32 %v736_v30, %v333_v40  ;;  %v673_v48 = vmul.f32 0.5, %v609_v36  ;;  %v640_v7 = vcvt.s32.f32 %v576_v1  ;;  %v2078_v10 = vadd.f32 1e-07, %v1495_v51  ;;  %vm1969_vm11 = vmor %vm1967_vm7, %vm1968_vm9 }
 0x1f7   :  { %v1501_v49 = vadd.f32 %v2674_v29, %v1500_v15  ;;  %v1964_v16 = vsub.f32 1.0, %v1963_v58  ;;  %v641_v53 = vcvt.s32.f32 %v577_v50  ;;  %v546_v54 = vunpack.c.3.s8 %v3849_v27 }
 0x1f8   :  { %v2386_v57 = vmul.f32 -1.442695, %v800_v9  ;;  %v737_v13 = vadd.f32 1.0, %v673_v48  ;;  %v704_v61 = vmul.f32 0.5, %v640_v7  ;;  %v2142_v60 = vmul.f32 0.9999998, %v2078_v10 }
 0x1f9   :  { %v2678_v11 = vpop.eup %2677  ;;  %v1505_v14 = vsel %vm1504_vm10, %v2674_v29, %v1501_v49  ;;  %v1965_v23 = vmul.f32 %v2676_v59, %v1964_v16  ;;  %v705_v47 = vmul.f32 0.5, %v641_v53  ;;  %vm1972_vm12 = vcmp.eq.f32.partialorder %v1971_v45, 8.507059e+37 }
 0x1fa   :  { %v1510_v18 = vsel %vm4061_vm5, %v1509_v2, %v1505_v14  ;;  %v4082_v0 = vadd.f32 1.0, %v2678_v11  ;;  %2679 = vpow2.f32 %v2386_v57  ;;  %v801_v8 = vmul.f32 %v737_v13, %v446_v12  ;;  %2206 = vst [vmem:[#allocation2 + $0xd0] sm:$0xff] %v2142_v60 }
 0x1fb   :  { %v2079_v6 = vadd.f32 1e-07, %v1510_v18  ;;  %v1966_v33 = vadd.f32 %v2676_v59, %v1965_v23  ;;  %v768_v22 = vadd.f32 1.0, %v704_v61  ;;  %v769_v21 = vadd.f32 1.0, %v705_v47 }
 0x1fc   :  { %v1974_v27 = vor.u32 1.1754944e-38, %v1973_v52  ;;  %2681 = vrcp.f32 %v4082_v0  ;;  %v2387_v24 = vmul.f32 -1.442695, %v801_v8  ;;  %v610_v43 = vcvt.s32.f32 %v546_v54  ;;  %v449_v8 = vpop.f32.mrf.mxu1 }
 0x1fd   :  { %v2143_v35 = vmul.f32 0.9999998, %v2079_v6  ;;  %v1970_v32 = vsel %vm1969_vm11, %v2676_v59, %v1966_v33  ;;  %v832_v3 = vmul.f32 %v768_v22, %v381_v55  ;;  %v833_v39 = vmul.f32 %v769_v21, %v494_v20  ;;  %v384_v55 = vpop.f32.mrf.mxu2  ;;  %v497_v20 = vpop.f32.mrf.mxu3 }
 0x1fe   :  { %v1975_v34 = vsel %vm1972_vm12, %v1974_v27, %v1970_v32  ;;  %2683 = vpow2.f32 %v2387_v24  ;;  %v547_v56 = vunpack.c.3.s8 %v3908_v19  ;;  %v578_v62 = vunpack.c.3.s8 %v3913_v5  ;;  %v336_v19 = vpop.f32.mrf.mxu0 }
 0x1ff   :  { %2207 = vst [vmem:[#allocation2 + $0xd8] sm:$0xff] %v2143_v35  ;;  %v2110_v42 = vadd.f32 1e-07, %v1975_v34  ;;  %v2418_v29 = vmul.f32 -1.442695, %v832_v3  ;;  %v579_v44 = vunpack.c.3.s8 %v3923_v26  ;;  %v674_v17 = vmul.f32 0.5, %v610_v43 }
 0x200   :  { %v2680_v2 = vpop.eup %2679  ;;  %v2419_v41 = vmul.f32 -1.442695, %v833_v39  ;;  %v611_v37 = vcvt.s32.f32 %v547_v56  ;;  %v1986_v52 = vand.u32 2147483647, %v4082_v0  ;;  %v1988_v25 = vand.u32 2147483648, %v4082_v0 }
 0x201   :  { %v2174_v38 = vmul.f32 0.9999998, %v2110_v42  ;;  %v4091_v28 = vadd.f32 1.0, %v2680_v2  ;;  %2685 = vpow2.f32 %v2418_v29  ;;  %v738_v5 = vadd.f32 1.0, %v674_v17 }
 0x202   :  { %v2682_v31 = vpop.eup %2681  ;;  %2687 = vpow2.f32 %v2419_v41  ;;  %v642_v26 = vcvt.s32.f32 %v578_v62  ;;  %v643_v30 = vcvt.s32.f32 %v579_v44  ;;  %vm1982_vm13 = vweird.f32 %v4082_v0 }
 0x203   :  { %2238 = vst [vmem:[#allocation2 + $0x1d0] sm:$0xff] %v2174_v38  ;;  %v1978_v45 = vmul.f32 %v2682_v31, %v4082_v0  ;;  %2689 = vrcp.f32 %v4091_v28  ;;  %v802_v46 = vmul.f32 %v738_v5, %v336_v19  ;;  %v675_v36 = vmul.f32 0.5, %v611_v37 }
 0x204   :  { %v2684_v4 = vpop.eup %2683  ;;  %vm1983_vm14 = vweird.f32 %v2682_v31  ;;  %vm4100_vm15 = vcmp.eq.f32.partialorder %v1986_v52, 8.507059e+37  ;;  %v1989_v15 = vor.u32 1.1754944e-38, %v1988_v25  ;;  %v1521_v51 = vand.u32 2147483647, %v4091_v28 }
 0x205   :  { %v1979_v40 = vsub.f32 1.0, %v1978_v45  ;;  %v4098_v59 = vadd.f32 1.0, %v2684_v4  ;;  %v1523_v9 = vand.u32 2147483648, %v4091_v28  ;;  %v706_v48 = vmul.f32 0.5, %v642_v26  ;;  %vm1984_vm0 = vmor %vm1982_vm13, %vm1983_vm14 }
 0x206   :  { %v707_v12 = vmul.f32 0.5, %v643_v30  ;;  %vm1517_vm1 = vweird.f32 %v4091_v28  ;;  %v2388_v57 = vmul.f32 -1.442695, %v802_v46  ;;  %v739_v13 = vadd.f32 1.0, %v675_v36 }
 0x207   :  { %v2686_v1 = vpop.eup %2685  ;;  %v1980_v50 = vmul.f32 %v2682_v31, %v1979_v40  ;;  %2691 = vrcp.f32 %v4098_v59  ;;  %v1536_v54 = vand.u32 2147483647, %v4098_v59  ;;  %v1538_v11 = vand.u32 2147483648, %v4098_v59 }
 0x208   :  { %v2688_v58 = vpop.eup %2687  ;;  %v4107_v49 = vadd.f32 1.0, %v2686_v1  ;;  %v770_v23 = vadd.f32 1.0, %v706_v48  ;;  %vm4121_vm2 = vcmp.eq.f32.partialorder %v1521_v51, 8.507059e+37  ;;  %v1524_v0 = vor.u32 1.1754944e-38, %v1523_v9 }
 0x209   :  { %v2690_v7 = vpop.eup %2689  ;;  %v1981_v10 = vadd.f32 %v2682_v31, %v1980_v50  ;;  %v4109_v16 = vadd.f32 1.0, %v2688_v58  ;;  %v771_v6 = vadd.f32 1.0, %v707_v12  ;;  %vm1532_vm4 = vweird.f32 %v4098_v59 }
 0x20a   :  { %v1513_v53 = vmul.f32 %v2690_v7, %v4091_v28  ;;  %2693 = vrcp.f32 %v4107_v49  ;;  %vm1518_vm3 = vweird.f32 %v2690_v7  ;;  %vm4127_vm5 = vcmp.eq.f32.partialorder %v1536_v54, 8.507059e+37 }
 0x20b   :  { %v1985_v61 = vsel %vm1984_vm0, %v2682_v31, %v1981_v10  ;;  %2695 = vrcp.f32 %v4109_v16  ;;  %v1539_v32 = vor.u32 1.1754944e-38, %v1538_v11  ;;  %v2001_v3 = vand.u32 2147483647, %v4107_v49  ;;  %vm1519_vm6 = vmor %vm1517_vm1, %vm1518_vm3 }
 0x20c   :  { %v1990_v60 = vsel %vm4100_vm15, %v1989_v15, %v1985_v61  ;;  %v1514_v14 = vsub.f32 1.0, %v1513_v53  ;;  %2697 = vpow2.f32 %v2388_v57  ;;  %v803_v34 = vmul.f32 %v739_v13, %v449_v8 }
 0x20d   :  { %v2111_v47 = vadd.f32 1e-07, %v1990_v60  ;;  %v2692_v33 = vpop.eup %2691  ;;  %v834_v39 = vmul.f32 %v770_v23, %v384_v55  ;;  %v2003_v43 = vand.u32 2147483648, %v4107_v49  ;;  %v2016_v2 = vand.u32 2147483647, %v4109_v16 }
 0x20e   :  { %v1515_v22 = vmul.f32 %v2690_v7, %v1514_v14  ;;  %v1528_v27 = vmul.f32 %v2692_v33, %v4098_v59  ;;  %v835_v41 = vmul.f32 %v771_v6, %v497_v20  ;;  %v2018_v38 = vand.u32 2147483648, %v4109_v16 }
 0x20f   :  { %v2175_v21 = vmul.f32 0.9999998, %v2111_v47  ;;  %v2389_v17 = vmul.f32 -1.442695, %v803_v34  ;;  %vm1533_vm7 = vweird.f32 %v2692_v33  ;;  %v2420_v19 = vmul.f32 -1.442695, %v834_v39 }
 0x210   :  { %v1516_v24 = vadd.f32 %v2690_v7, %v1515_v22  ;;  %v2694_v42 = vpop.eup %2693  ;;  %v1529_v29 = vsub.f32 1.0, %v1528_v27  ;;  %v2421_v40 = vmul.f32 -1.442695, %v835_v41  ;;  %vm1534_vm8 = vmor %vm1532_vm4, %vm1533_vm7  ;;  %vm1997_vm11 = vweird.f32 %v4107_v49 }
 0x211   :  { %2239 = vst [vmem:[#allocation2 + $0x1d8] sm:$0xff] %v2175_v21  ;;  %v2696_v56 = vpop.eup %2695  ;;  %v1993_v44 = vmul.f32 %v2694_v42, %v4107_v49  ;;  %2699 = vpow2.f32 %v2389_v17  ;;  %vm1998_vm9 = vweird.f32 %v2694_v42  ;;  %vm2012_vm12 = vweird.f32 %v4109_v16 }
 0x212   :  { %v1520_v62 = vsel %vm1519_vm6, %v2690_v7, %v1516_v24  ;;  %v1530_v37 = vmul.f32 %v2692_v33, %v1529_v29  ;;  %v2008_v28 = vmul.f32 %v2696_v56, %v4109_v16  ;;  %v2698_v45 = vpop.eup %2697  ;;  %2701 = vpow2.f32 %v2420_v19  ;;  %vm1999_vm13 = vmor %vm1997_vm11, %vm1998_vm9 }
 0x213   :  { %v1525_v31 = vsel %vm4121_vm2, %v1524_v0, %v1520_v62  ;;  %v1994_v25 = vsub.f32 1.0, %v1993_v44  ;;  %v1058_v4 = vadd.f32 1.0, %v2698_v45  ;;  %vm2013_vm10 = vweird.f32 %v2696_v56 }
 0x214   :  { %v2080_v52 = vadd.f32 1e-07, %v1525_v31  ;;  %v1531_v5 = vadd.f32 %v2692_v33, %v1530_v37  ;;  %v2009_v26 = vsub.f32 1.0, %v2008_v28  ;;  %v2004_v59 = vor.u32 1.1754944e-38, %v2003_v43  ;;  %vm2014_vm15 = vmor %vm2012_vm12, %vm2013_vm10 }
 0x215   :  { %v1995_v46 = vmul.f32 %v2694_v42, %v1994_v25  ;;  %2703 = vrcp.f32 %v1058_v4  ;;  %vm2002_vm14 = vcmp.eq.f32.partialorder %v2001_v3, 8.507059e+37  ;;  %vm2017_vm0 = vcmp.eq.f32.partialorder %v2016_v2, 8.507059e+37 }
 0x216   :  { %v2144_v30 = vmul.f32 0.9999998, %v2080_v52  ;;  %v1535_v36 = vsel %vm1534_vm8, %v2692_v33, %v1531_v5  ;;  %v2010_v1 = vmul.f32 %v2696_v56, %v2009_v26  ;;  %2705 = vpow2.f32 %v2421_v40 }
 0x217   :  { %v1540_v50 = vsel %vm4127_vm5, %v1539_v32, %v1535_v36  ;;  %v1996_v63 = vadd.f32 %v2694_v42, %v1995_v46  ;;  %v2700_v51 = vpop.eup %2699  ;;  %v2019_v48 = vor.u32 1.1754944e-38, %v2018_v38  ;;  %vm1547_vm1 = vweird.f32 %v1058_v4 }
 0x218   :  { %2208 = vst [vmem:[#allocation2 + $0xe0] sm:$0xff] %v2144_v30  ;;  %v2081_v15 = vadd.f32 1e-07, %v1540_v50  ;;  %v2011_v58 = vadd.f32 %v2696_v56, %v2010_v1  ;;  %v1059_v53 = vadd.f32 1.0, %v2700_v51  ;;  %v2702_v57 = vpop.eup %2701  ;;  %v1553_v0 = vand.u32 2147483648, %v1058_v4 }
 0x219   :  { %v2000_v9 = vsel %vm1999_vm13, %v2694_v42, %v1996_v63  ;;  %v1090_v23 = vadd.f32 1.0, %v2702_v57  ;;  %v1551_v55 = vand.u32 2147483647, %v1058_v4 }
 0x21a   :  { %v2145_v7 = vmul.f32 0.9999998, %v2081_v15  ;;  %v2005_v10 = vsel %vm2002_vm14, %v2004_v59, %v2000_v9  ;;  %v2015_v12 = vsel %vm2014_vm15, %v2696_v56, %v2011_v58  ;;  %2707 = vrcp.f32 %v1059_v53 }
 0x21b   :  { %v2112_v49 = vadd.f32 1e-07, %v2005_v10  ;;  %v2020_v13 = vsel %vm2017_vm0, %v2019_v48, %v2015_v12  ;;  %v2704_v16 = vpop.eup %2703  ;;  %2709 = vrcp.f32 %v1090_v23  ;;  %v1554_v20 = vor.u32 1.1754944e-38, %v1553_v0 }
 0x21c   :  { %2209 = vst [vmem:[#allocation2 + $0xe8] sm:$0xff] %v2145_v7  ;;  %v2113_v61 = vadd.f32 1e-07, %v2020_v13  ;;  %v1543_v11 = vmul.f32 %v2704_v16, %v1058_v4  ;;  %v2706_v60 = vpop.eup %2705  ;;  %vm1548_vm2 = vweird.f32 %v2704_v16  ;;  %vm1552_vm4 = vcmp.eq.f32.partialorder %v1551_v55, 8.507059e+37 }
 0x21d   :  { %v2176_v54 = vmul.f32 0.9999998, %v2112_v49  ;;  %v1091_v18 = vadd.f32 1.0, %v2706_v60  ;;  %vm1549_vm3 = vmor %vm1547_vm1, %vm1548_vm2  ;;  %v1566_v35 = vand.u32 2147483647, %v1059_v53  ;;  %vm1562_vm5 = vweird.f32 %v1059_v53 }
 0x21e   :  { %v2177_v14 = vmul.f32 0.9999998, %v2113_v61  ;;  %v1544_v47 = vsub.f32 1.0, %v1543_v11  ;;  %v1568_v3 = vand.u32 2147483648, %v1059_v53  ;;  %v2031_v44 = vand.u32 2147483647, %v1090_v23 }
 0x21f   :  { %2240 = vst [vmem:[#allocation2 + $0x1e0] sm:$0xff] %v2176_v54  ;;  %2711 = vrcp.f32 %v1091_v18  ;;  %vm1567_vm7 = vcmp.eq.f32.partialorder %v1566_v35, 8.507059e+37  ;;  %v2033_v38 = vand.u32 2147483648, %v1090_v23  ;;  %v2048_v28 = vand.u32 2147483648, %v1091_v18 }
 0x220   :  { %2241 = vst [vmem:[#allocation2 + $0x1e8] sm:$0xff] %v2177_v14  ;;  %v1545_v8 = vmul.f32 %v2704_v16, %v1544_v47  ;;  %v2708_v6 = vpop.eup %2707  ;;  %v1569_v62 = vor.u32 1.1754944e-38, %v1568_v3  ;;  %v2046_v25 = vand.u32 2147483647, %v1091_v18  ;;  %vm2027_vm11 = vweird.f32 %v1090_v23 }
 0x221   :  { %v1558_v22 = vmul.f32 %v2708_v6, %v1059_v53  ;;  %v2710_v32 = vpop.eup %2709  ;;  %vm1563_vm6 = vweird.f32 %v2708_v6  ;;  %v2034_v26 = vor.u32 1.1754944e-38, %v2033_v38  ;;  %vm2042_vm13 = vweird.f32 %v1091_v18 }
 0x222   :  { %v1546_v33 = vadd.f32 %v2704_v16, %v1545_v8  ;;  %v2023_v29 = vmul.f32 %v2710_v32, %v1090_v23  ;;  %vm1564_vm8 = vmor %vm1562_vm5, %vm1563_vm6  ;;  %vm2028_vm9 = vweird.f32 %v2710_v32  ;;  %vm2032_vm14 = vcmp.eq.f32.partialorder %v2031_v44, 8.507059e+37 }
 0x223   :  { %v1559_v27 = vsub.f32 1.0, %v1558_v22  ;;  %vm2029_vm12 = vmor %vm2027_vm11, %vm2028_vm9  ;;  %v2049_v46 = vor.u32 1.1754944e-38, %v2048_v28  ;;  %vm2047_vm0 = vcmp.eq.f32.partialorder %v2046_v25, 8.507059e+37 }
 0x224   :  { %v1550_v21 = vsel %vm1549_vm3, %v2704_v16, %v1546_v33  ;;  %v2024_v56 = vsub.f32 1.0, %v2023_v29 }
 0x225   :  { %v1555_v24 = vsel %vm1552_vm4, %v1554_v20, %v1550_v21  ;;  %v2712_v34 = vpop.eup %2711  ;;  %v1560_v42 = vmul.f32 %v2708_v6, %v1559_v27 }
 0x226   :  { %v2082_v39 = vadd.f32 1e-07, %v1555_v24  ;;  %v2038_v43 = vmul.f32 %v2712_v34, %v1091_v18  ;;  %v2025_v37 = vmul.f32 %v2710_v32, %v2024_v56  ;;  %vm2043_vm10 = vweird.f32 %v2712_v34 }
 0x227   :  { %v1561_v41 = vadd.f32 %v2708_v6, %v1560_v42  ;;  %vm2044_vm15 = vmor %vm2042_vm13, %vm2043_vm10 }
 0x228   :  { %v2146_v2 = vmul.f32 0.9999998, %v2082_v39  ;;  %v2039_v17 = vsub.f32 1.0, %v2038_v43  ;;  %v2026_v5 = vadd.f32 %v2710_v32, %v2025_v37 }
 0x229   :  { %v1565_v31 = vsel %vm1564_vm8, %v2708_v6, %v1561_v41 }
 0x22a   :  { %2210 = vst [vmem:[#allocation2 + $0xf0] sm:$0xff] %v2146_v2  ;;  %v1570_v45 = vsel %vm1567_vm7, %v1569_v62, %v1565_v31  ;;  %v2040_v52 = vmul.f32 %v2712_v34, %v2039_v17  ;;  %v2030_v30 = vsel %vm2029_vm12, %v2710_v32, %v2026_v5 }
 0x22b   :  { %v2083_v19 = vadd.f32 1e-07, %v1570_v45  ;;  %v2035_v36 = vsel %vm2032_vm14, %v2034_v26, %v2030_v30 }
 0x22c   :  { %v2041_v4 = vadd.f32 %v2712_v34, %v2040_v52  ;;  %v2114_v50 = vadd.f32 1e-07, %v2035_v36 }
 0x22d   :  { %v2147_v40 = vmul.f32 0.9999998, %v2083_v19 }
 0x22e   :  { %v2045_v1 = vsel %vm2044_vm15, %v2712_v34, %v2041_v4  ;;  %v2178_v59 = vmul.f32 0.9999998, %v2114_v50 }
 0x22f   :  { %2211 = vst [vmem:[#allocation2 + $0xf8] sm:$0xff] %v2147_v40  ;;  %v2050_v63 = vsel %vm2047_vm0, %v2049_v46, %v2045_v1 }
 0x230   :  { %v2115_v15 = vadd.f32 1e-07, %v2050_v63  ;;  %2242 = vst [vmem:[#allocation2 + $0x1f0] sm:$0xff] %v2178_v59 }
 0x232   :  { %v2179_v58 = vmul.f32 0.9999998, %v2115_v15 }
 0x234   :  { %2243 = vst [vmem:[#allocation2 + $0x1f8] sm:$0xff] %v2179_v58 }
 0x235   :  { %2256 = dma.vmem_to_hbm [thread:$0]  %s2249_s5, 8192, %s2251_s8, [#allocation3], %s2740_s9, %s2740_s9, %s2741_s2  }
 0x236   :  { %2737 = dma.done.wait [#allocation3], 8192  }
 0x237   :  { %2738 = vsyncadd [#allocation3], 4294959104 }
 0x238   :  { %2261 = vsyncpa [#allocation3], 1 }

</bundles_post_ra>
